<compile_context>
chip_gen: v6e
topology: v6e:2x2x1
jax: 0.10.0
libtpu: 0.0.40
codegen_flags: <defaults>
</compile_context>

<pallas_src>
import functools

import jax
import jax.numpy as jnp
from jax.experimental import pallas as pl
from jax.experimental.pallas import tpu as pltpu

KH = KW = 3          # conv kernel size (padding=1, stride=1)
LANE = 128           # TPU lane width


def _round_up(x, m):
    return (x + m - 1) // m * m


def convnet_kernel(patch_ref, cw_ref, cb_ref, wf_ref, bf_ref, out_ref, *, bsz, hw):
    """Per-batch-block forward pass.

    patch_ref: (bsz*hw, K)    im2col patch rows for this batch block (bf16)
    cw_ref   : (K, CP)        im2col conv weight, Cout padded to CP (bf16)
    cb_ref   : (1, CP)        conv bias (f32, zero-padded)
    wf_ref   : (CP, NCLSP)    fused (predictor @ classifier) weight, pre-scaled
                              by 1/(H*W) so GAP is a plain sum (bf16)
    bf_ref   : (1, NCLSP)     fused bias (f32, zero-padded)
    out_ref  : (bsz, NCLSP)   lane/sublane-dense padded logits (f32)
    """
    cp = cw_ref.shape[-1]

    # --- Conv2d(Cin, Cout, 3, pad=1) as ONE bf16 MXU matmul, f32 acc ---
    acc = jnp.dot(patch_ref[...], cw_ref[...],
                  preferred_element_type=jnp.float32)          # (bsz*hw, CP)
    acc = jnp.maximum(acc + cb_ref[...], 0.0)                  # bias + ReLU (f32)

    # --- global average pool: plain cross-sublane sum (scale folded into wf) ---
    emb = acc.reshape(bsz, hw, cp).sum(axis=1)                 # (bsz, CP), f32

    # --- fused predictor_online + classifier (no nonlinearity between) ---
    logits = jnp.dot(emb.astype(jnp.bfloat16), wf_ref[...],
                     preferred_element_type=jnp.float32) + bf_ref[...]

    out_ref[...] = logits


def init_params(key, cin, embedding, projection_size, n_classes):
    """Deterministic PyTorch-shaped parameters."""
    k = jax.random.split(key, 6)

    def u(kk, shape, fan_in):
        bound = 1.0 / jnp.sqrt(fan_in)
        return jax.random.uniform(kk, shape, jnp.float32, -bound, bound)

    conv_w = u(k[0], (embedding, cin, KH, KW), cin * KH * KW)   # (Cout,Cin,3,3)
    conv_b = u(k[1], (embedding,), cin * KH * KW)
    w1 = u(k[2], (projection_size, embedding), embedding)       # (out,in)
    b1 = u(k[3], (projection_size,), embedding)
    w2 = u(k[4], (n_classes, projection_size), projection_size)
    b2 = u(k[5], (n_classes,), projection_size)
    return conv_w, conv_b, w1, b1, w2, b2


def convnet_forward(x_nchw, params, n_classes, batch_block=16):
    conv_w, conv_b, w1, b1, w2, b2 = params
    N, Cin, H, W = x_nchw.shape
    Cout = conv_w.shape[0]
    K = KH * KW * Cin
    HW = H * W

    CP = _round_up(Cout, LANE)           # lane-dense conv channels
    NCLSP = _round_up(n_classes, LANE)   # lane-dense output

    # Batch block: multiple of 8 (sublane-dense output block); pad N up to it.
    B = min(batch_block, _round_up(N, 8))
    N_pad = _round_up(N, B)

    # ---- plain-JAX layout plumbing (done once, outside the kernel) ----
    # NCHW -> NHWC, zero pad spatial dims (conv padding=1).
    x_nhwc = jnp.transpose(x_nchw, (0, 2, 3, 1)).astype(jnp.float32)
    x_sp = jnp.pad(x_nhwc, ((0, 0), (1, 1), (1, 1), (0, 0)))

    # im2col in the wrapper: (N, H, W, KH*KW*Cin), tap order (kh, kw, cin)
    # matching the conv-weight flatten below. One fused XLA op chain.
    taps = [x_sp[:, kh:kh + H, kw:kw + W, :]
            for kh in range(KH) for kw in range(KW)]
    patches = jnp.concatenate(taps, axis=-1).reshape(N * HW, K)
    patches = patches.astype(jnp.bfloat16)
    # Pad batch rows (zero rows -> harmless padded logits, sliced off below).
    patches = jnp.pad(patches, ((0, (N_pad - N) * HW), (0, 0)))

    # conv weight (Cout,Cin,KH,KW) -> im2col layout (KH*KW*Cin, Cout) -> pad.
    cw = jnp.transpose(conv_w, (2, 3, 1, 0)).reshape(K, Cout)
    cw = jnp.pad(cw, ((0, 0), (0, CP - Cout))).astype(jnp.bfloat16)
    cb = jnp.pad(conv_b, (0, CP - Cout)).reshape(1, CP).astype(jnp.float32)

    # Fuse predictor_online and classifier (no activation between them) and
    # fold the global-average-pool 1/(H*W) scale into the fused weight
    # (exact for power-of-two H*W).
    wf = (w1.T @ w2.T) * (1.0 / HW)                      # (Cout, n_classes)
    bf = b1 @ w2.T + b2                                  # (n_classes,)
    wf = jnp.pad(wf, ((0, CP - Cout), (0, NCLSP - n_classes))).astype(jnp.bfloat16)
    bf = jnp.pad(bf, (0, NCLSP - n_classes)).reshape(1, NCLSP).astype(jnp.float32)

    out = pl.pallas_call(
        functools.partial(convnet_kernel, bsz=B, hw=HW),
        out_shape=jax.ShapeDtypeStruct((N_pad, NCLSP), jnp.float32),
        grid=(N_pad // B,),
        in_specs=[
            # per-step patch rows for this batch block
            pl.BlockSpec((B * HW, K), lambda b: (b, 0)),
            # weights: full-array blocks with constant index maps -> resident
            pl.BlockSpec((K, CP), lambda b: (0, 0)),
            pl.BlockSpec((1, CP), lambda b: (0, 0)),
            pl.BlockSpec((CP, NCLSP), lambda b: (0, 0)),
            pl.BlockSpec((1, NCLSP), lambda b: (0, 0)),
        ],
        out_specs=pl.BlockSpec((B, NCLSP), lambda b: (b, 0)),
        compiler_params=pltpu.CompilerParams(
            dimension_semantics=("parallel",),
            # Tiles here are small (~a few MiB incl. the f32 conv accumulator).
            # 48 MiB keeps headroom under v7x's 64 MiB physical VMEM while
            # allowing larger B / Cout tiles on v5e/v6e.
            vmem_limit_bytes=48 * 1024 * 1024,
        ),
    )(patches, cw, cb, wf, bf)

    return out[:N, :n_classes]


def convnet_reference(x_nchw, params):
    """Pure-JAX f32 reference matching PyTorch semantics."""
    conv_w, conv_b, w1, b1, w2, b2 = params
    y = jax.lax.conv_general_dilated(
        x_nchw.astype(jnp.float32), conv_w, (1, 1), ((1, 1), (1, 1)),
        dimension_numbers=("NCHW", "OIHW", "NCHW"))
    y = jax.nn.relu(y + conv_b[None, :, None, None])
    emb = jnp.mean(y, axis=(2, 3))                 # global avg pool + flatten
    proj = emb @ w1.T + b1
    return proj @ w2.T + b2


if __name__ == "__main__":
    N, Cin, H, W = 2, 4, 16, 16
    embedding, projection_size, n_classes = 32, 16, 10

    key = jax.random.PRNGKey(0)
    kx, kp = jax.random.split(key)
    x = jax.random.normal(kx, (N, Cin, H, W), jnp.float32)
    params = init_params(kp, Cin, embedding, projection_size, n_classes)

    out = jax.block_until_ready(convnet_forward(x, params, n_classes))
    ref = jax.block_until_ready(convnet_reference(x, params))

    assert out.shape == (N, n_classes)
    # bf16 MXU inputs (f32 accumulation) -> slightly looser tolerance vs f32 ref.
    assert jnp.allclose(out, ref, atol=1e-2, rtol=1e-2), "mismatch vs reference"
    print("KERNEL_OK")
</pallas_src>

<mosaic_0001>
module attributes {stable_mosaic.version = 11 : i64} {
  func.func @convnet_kernel(%arg0: i32, %arg1: memref<2048x36xbf16, #tpu.memory_space<vmem>>, %arg2: memref<36x128xbf16, #tpu.memory_space<vmem>>, %arg3: memref<1x128xf32, #tpu.memory_space<vmem>>, %arg4: memref<128x128xbf16, #tpu.memory_space<vmem>>, %arg5: memref<1x128xf32, #tpu.memory_space<vmem>>, %arg6: memref<8x128xf32, #tpu.memory_space<vmem>>) attributes {dimension_semantics = [#tpu.dimension_semantics<parallel>], iteration_bounds = array<i64: 1>, scalar_prefetch = 0 : i64, scratch_operands = 0 : i64, tpu.core_type = #tpu.core_type<tc>, window_params = [{transform_indices = @transform_0, window_bounds = array<i64: 2048, 36>}, {pipeline_mode = #tpu.pipeline_mode<synchronous>, transform_indices = @transform_1, window_bounds = array<i64: 36, 128>}, {pipeline_mode = #tpu.pipeline_mode<synchronous>, transform_indices = @transform_2, window_bounds = array<i64: 1, 128>}, {pipeline_mode = #tpu.pipeline_mode<synchronous>, transform_indices = @transform_3, window_bounds = array<i64: 128, 128>}, {pipeline_mode = #tpu.pipeline_mode<synchronous>, transform_indices = @transform_4, window_bounds = array<i64: 1, 128>}, {transform_indices = @transform_5, window_bounds = array<i64: 8, 128>}]} {
    %c0 = arith.constant 0 : index
    %c0_0 = arith.constant 0 : index
    %0 = vector.load %arg1[%c0, %c0_0] : memref<2048x36xbf16, #tpu.memory_space<vmem>>, vector<2048x36xbf16>
    %c0_1 = arith.constant 0 : index
    %c0_2 = arith.constant 0 : index
    %1 = vector.load %arg2[%c0_1, %c0_2] : memref<36x128xbf16, #tpu.memory_space<vmem>>, vector<36x128xbf16>
    %cst = arith.constant dense<0.000000e+00> : vector<2048x128xf32>
    %2 = tpu.matmul %0, %1, %cst {dimension_numbers = #tpu.dot_dimension_numbers<[1], [0], [0], [1], [0, 0, 1, 1], [], []>} : vector<2048x36xbf16>, vector<36x128xbf16>, vector<2048x128xf32> -> vector<2048x128xf32>
    %c0_3 = arith.constant 0 : index
    %c0_4 = arith.constant 0 : index
    %3 = vector.load %arg3[%c0_3, %c0_4] : memref<1x128xf32, #tpu.memory_space<vmem>>, vector<1x128xf32>
    %4 = vector.broadcast %3 : vector<1x128xf32> to vector<2048x128xf32>
    %5 = arith.addf %2, %4 : vector<2048x128xf32>
    %cst_5 = arith.constant 0.000000e+00 : f32
    %6 = vector.broadcast %cst_5 : f32 to vector<2048x128xf32>
    %7 = arith.maximumf %5, %6 : vector<2048x128xf32>
    %8 = vector.shape_cast %7 : vector<2048x128xf32> to vector<8x256x128xf32>
    %cst_6 = arith.constant dense<0.000000e+00> : vector<8x128xf32>
    %9 = vector.multi_reduction <add>, %8, %cst_6 [1] : vector<8x256x128xf32> to vector<8x128xf32>
    %10 = arith.truncf %9 : vector<8x128xf32> to vector<8x128xbf16>
    %c0_7 = arith.constant 0 : index
    %c0_8 = arith.constant 0 : index
    %11 = vector.load %arg4[%c0_7, %c0_8] : memref<128x128xbf16, #tpu.memory_space<vmem>>, vector<128x128xbf16>
    %cst_9 = arith.constant dense<0.000000e+00> : vector<8x128xf32>
    %12 = tpu.matmul %10, %11, %cst_9 {dimension_numbers = #tpu.dot_dimension_numbers<[1], [0], [0], [1], [0, 0, 1, 1], [], []>} : vector<8x128xbf16>, vector<128x128xbf16>, vector<8x128xf32> -> vector<8x128xf32>
    %c0_10 = arith.constant 0 : index
    %c0_11 = arith.constant 0 : index
    %13 = vector.load %arg5[%c0_10, %c0_11] : memref<1x128xf32, #tpu.memory_space<vmem>>, vector<1x128xf32>
    %14 = vector.broadcast %13 : vector<1x128xf32> to vector<8x128xf32>
    %15 = arith.addf %12, %14 : vector<8x128xf32>
    %c0_12 = arith.constant 0 : index
    %c0_13 = arith.constant 0 : index
    %16 = vector.load %arg6[%c0_12, %c0_13] : memref<8x128xf32, #tpu.memory_space<vmem>>, vector<8x128xf32>
    tpu.vector_store %arg6[%c0_12, %c0_13], %15 {strides = array<i32>} : memref<8x128xf32, #tpu.memory_space<vmem>>, vector<8x128xf32>,
    return
  }
  func.func @transform_0(%arg0: i32) -> (i32, i32) {
    %c0_i32 = arith.constant 0 : i32
    %c0_i32_0 = arith.constant 0 : i32
    return %arg0, %c0_i32 : i32, i32
  }
  func.func @transform_1(%arg0: i32) -> (i32, i32) {
    %c0_i32 = arith.constant 0 : i32
    %c0_i32_0 = arith.constant 0 : i32
    %c0_i32_1 = arith.constant 0 : i32
    return %c0_i32, %c0_i32_0 : i32, i32
  }
  func.func @transform_2(%arg0: i32) -> (i32, i32) {
    %c0_i32 = arith.constant 0 : i32
    %c0_i32_0 = arith.constant 0 : i32
    %c0_i32_1 = arith.constant 0 : i32
    return %c0_i32, %c0_i32_0 : i32, i32
  }
  func.func @transform_3(%arg0: i32) -> (i32, i32) {
    %c0_i32 = arith.constant 0 : i32
    %c0_i32_0 = arith.constant 0 : i32
    %c0_i32_1 = arith.constant 0 : i32
    return %c0_i32, %c0_i32_0 : i32, i32
  }
  func.func @transform_4(%arg0: i32) -> (i32, i32) {
    %c0_i32 = arith.constant 0 : i32
    %c0_i32_0 = arith.constant 0 : i32
    %c0_i32_1 = arith.constant 0 : i32
    return %c0_i32, %c0_i32_0 : i32, i32
  }
  func.func @transform_5(%arg0: i32) -> (i32, i32) {
    %c0_i32 = arith.constant 0 : i32
    %c0_i32_0 = arith.constant 0 : i32
    return %arg0, %c0_i32 : i32, i32
  }
}

</mosaic_0001>

<bundles_post_ra>
// kernel: tpu_custom_call.1
= control target key start
LH: loop header
LB: loop body
LE: loop exit
PB: predicated region body
PF: predicated region fallthrough
CT: control target
= control target key end

     0   :  { %vm1330_vm0 = vcmask 1041408   ;;  %vm945_vm1 = vcmask 293888   ;;  %s4944_s0 = inlined_call_operand.vmem [shape: bf16[2048,36], index: 0, kind: input, shape index: {}]   ;;  %s4945_s1 = inlined_call_operand.vmem [shape: bf16[36,128], index: 1, kind: input, shape index: {}]   ;;  %s4946_s2 = inlined_call_operand.vmem [shape: f32[1,128], index: 2, kind: input, shape index: {}]   ;;  %s4947_s3 = inlined_call_operand.vmem [shape: bf16[128,128], index: 3, kind: input, shape index: {}]   ;;  %s4948_s4 = inlined_call_operand.vmem [shape: f32[1,128], index: 4, kind: input, shape index: {}]   ;;  %s4949_s5 = inlined_call_operand.hbm [shape: f32[8,128], index: 5, kind: output, shape index: {}]  }
   0x1   :  { %v3811_v0 = vld [vmem:[%s4945_s1 + $0x10] ss:$0 sps:$4 sm:$0x33]   ;;  %v3812_v1 = vld [vmem:[%s4945_s1 + $0x8] sm:$0xff]   ;;  %v3814_v3 = vld [vmem:[%s4944_s0] sm:$0xff]  }
   0x2   :  { %3806 = vmatprep.subr.msk.bf16.mxu0 %vm1330_vm0, %v3811_v0  ;;  %v1332_v2 = vsel %vm1330_vm0, %v3811_v0, 0  ;;  %3807 = vmatprep.subr.msk.bf16.mxu1 %vm1330_vm0, %v3811_v0  ;;  %v3813_v4 = vld [vmem:[%s4945_s1] sm:$0xff]   ;;  %v3815_v5 = vld [vmem:[%s4944_s0 + $0x8] sm:$0xff]   ;;  %v3816_v6 = vld [vmem:[%s4944_s0 + $0x10] sm:$0xff]  }
   0x3   :  { %3519 = vmatpush3.bf16.msra.mxu0 %v1332_v2  ;;  %3803 = vmatpush3.bf16.msra.mxu1 %v1332_v2  ;;  %v3817_v7 = vld [vmem:[%s4944_s0 + $0x18] sm:$0xff]   ;;  %v3818_v8 = vld [vmem:[%s4944_s0 + $0x20] sm:$0xff]   ;;  %v3830_v9 = vld [vmem:[%s4944_s0 + $0x210] sm:$0xff]  }
   0x4   :  { %3520 = vmatprep.subr.bf16.mxu0 %v3812_v1  ;;  %3801 = vmatprep.subr.bf16.mxu1 %v3812_v1  ;;  %v3831_v10 = vld [vmem:[%s4944_s0 + $0x218] sm:$0xff]   ;;  %v3834_v11 = vld [vmem:[%s4944_s0 + $0x220] sm:$0xff]   ;;  %v3819_v12 = vld [vmem:[%s4944_s0 + $0x28] sm:$0xff]  }
   0x5   :  { %3524 = vmatprep.mubr.msk.bf16.mxu0 %vm945_vm1, %v3814_v3  ;;  %3656 = vmatprep.mubr.msk.bf16.mxu1 %vm945_vm1, %v3830_v9  ;;  %v3820_v13 = vld [vmem:[%s4944_s0 + $0x30] sm:$0xff]   ;;  %v3835_v14 = vld [vmem:[%s4944_s0 + $0x228] sm:$0xff]   ;;  %v3821_v16 = vld [vmem:[%s4944_s0 + $0x38] sm:$0xff]  }
   0x6   :  { %v3838_v15 = vld [vmem:[%s4944_s0 + $0x230] sm:$0xff]   ;;  %v3822_v17 = vld [vmem:[%s4944_s0 + $0x40] sm:$0xff]   ;;  %v3839_v18 = vld [vmem:[%s4944_s0 + $0x238] sm:$0xff]  }
   0x7   :  { %3521 = vmatpush3.bf16.msra.mxu0 %v3812_v1  ;;  %3804 = vmatpush3.bf16.msra.mxu1 %v3812_v1  ;;  %v3842_v19 = vld [vmem:[%s4944_s0 + $0x240] sm:$0xff]   ;;  %v3823_v20 = vld [vmem:[%s4944_s0 + $0x48] sm:$0xff]   ;;  %v3824_v21 = vld [vmem:[%s4944_s0 + $0x50] sm:$0xff]  }
   0x8   :  { %3522 = vmatprep.subr.bf16.mxu0 %v3813_v4  ;;  %3802 = vmatprep.subr.bf16.mxu1 %v3813_v4  ;;  %v3843_v22 = vld [vmem:[%s4944_s0 + $0x248] sm:$0xff]   ;;  %v3846_v23 = vld [vmem:[%s4944_s0 + $0x250] sm:$0xff]   ;;  %v3825_v24 = vld [vmem:[%s4944_s0 + $0x58] sm:$0xff]  }
   0x9   :  { %v3826_v25 = vld [vmem:[%s4944_s0 + $0x60] sm:$0xff]   ;;  %v3847_v26 = vld [vmem:[%s4944_s0 + $0x258] sm:$0xff]   ;;  %v3827_v28 = vld [vmem:[%s4944_s0 + $0x68] sm:$0xff]  }
   0xa   :  { %v3850_v27 = vld [vmem:[%s4944_s0 + $0x260] sm:$0xff]   ;;  %v3828_v29 = vld [vmem:[%s4944_s0 + $0x70] sm:$0xff]   ;;  %v3851_v30 = vld [vmem:[%s4944_s0 + $0x268] sm:$0xff]  }
   0xb   :  { %3523 = vmatpush3.bf16.msra.mxu0 %v3813_v4  ;;  %3805 = vmatpush3.bf16.msra.mxu1 %v3813_v4  ;;  %v3854_v31 = vld [vmem:[%s4944_s0 + $0x270] sm:$0xff]   ;;  %v3829_v32 = vld [vmem:[%s4944_s0 + $0x78] sm:$0xff]   ;;  %v3832_v33 = vld [vmem:[%s4944_s0 + $0x80] sm:$0xff]  }
   0xc   :  { %v3855_v34 = vld [vmem:[%s4944_s0 + $0x278] sm:$0xff]   ;;  %v3858_v35 = vld [vmem:[%s4944_s0 + $0x280] sm:$0xff]   ;;  %v3833_v36 = vld [vmem:[%s4944_s0 + $0x88] sm:$0xff]  }
   0xd   :  { %v3836_v37 = vld [vmem:[%s4944_s0 + $0x90] sm:$0xff]   ;;  %v3859_v38 = vld [vmem:[%s4944_s0 + $0x288] sm:$0xff]   ;;  %v3837_v40 = vld [vmem:[%s4944_s0 + $0x98] sm:$0xff]  }
   0xe   :  { %3525 = vmatmul.mubr.msk.bf16.vlgmr.msra.gmra.mxu0 %vm945_vm1, %v3815_v5  ;;  %3657 = vmatmul.mubr.msk.bf16.vlgmr.msra.gmra.mxu1 %vm945_vm1, %v3831_v10  ;;  %v3862_v39 = vld [vmem:[%s4944_s0 + $0x290] sm:$0xff]   ;;  %v3840_v41 = vld [vmem:[%s4944_s0 + $0xa0] sm:$0xff]   ;;  %v3863_v42 = vld [vmem:[%s4944_s0 + $0x298] sm:$0xff]  }
   0xf   :  { %3528 = vmatprep.mubr.msk.bf16.mxu0 %vm945_vm1, %v3816_v6  ;;  %3660 = vmatprep.mubr.msk.bf16.mxu1 %vm945_vm1, %v3834_v11  ;;  %v3866_v43 = vld [vmem:[%s4944_s0 + $0x2a0] sm:$0xff]   ;;  %v3841_v44 = vld [vmem:[%s4944_s0 + $0xa8] sm:$0xff]   ;;  %v3844_v45 = vld [vmem:[%s4944_s0 + $0xb0] sm:$0xff]  }
  0x10   :  { %v3867_v46 = vld [vmem:[%s4944_s0 + $0x2a8] sm:$0xff]   ;;  %v3870_v47 = vld [vmem:[%s4944_s0 + $0x2b0] sm:$0xff]   ;;  %v3845_v48 = vld [vmem:[%s4944_s0 + $0xb8] sm:$0xff]  }
  0x11   :  { %v3848_v49 = vld [vmem:[%s4944_s0 + $0xc0] sm:$0xff]   ;;  %v3871_v50 = vld [vmem:[%s4944_s0 + $0x2b8] sm:$0xff]   ;;  %v3849_v52 = vld [vmem:[%s4944_s0 + $0xc8] sm:$0xff]  }
  0x12   :  { %v3874_v51 = vld [vmem:[%s4944_s0 + $0x2c0] sm:$0xff]   ;;  %v3875_v53 = vld [vmem:[%s4944_s0 + $0x2c8] sm:$0xff]   ;;  %v3852_v54 = vld [vmem:[%s4944_s0 + $0xd0] sm:$0xff]  }
  0x13   :  { %v3878_v55 = vld [vmem:[%s4944_s0 + $0x2d0] sm:$0xff]   ;;  %v3853_v56 = vld [vmem:[%s4944_s0 + $0xd8] sm:$0xff]   ;;  %v3856_v58 = vld [vmem:[%s4944_s0 + $0xe0] sm:$0xff]  }
  0x14   :  { %v3879_v57 = vld [vmem:[%s4944_s0 + $0x2d8] sm:$0xff]   ;;  %v3882_v59 = vld [vmem:[%s4944_s0 + $0x2e0] sm:$0xff]   ;;  %v3857_v60 = vld [vmem:[%s4944_s0 + $0xe8] sm:$0xff]  }
  0x15   :  { %v3883_v61 = vld [vmem:[%s4944_s0 + $0x2e8] sm:$0xff]   ;;  %v3860_v62 = vld [vmem:[%s4944_s0 + $0xf0] sm:$0xff]   ;;  %v3861_v0 = vld [vmem:[%s4944_s0 + $0xf8] sm:$0xff]  }
  0x16   :  { %3529 = vmatmul.mubr.msk.bf16.gmra.mxu0 %vm945_vm1, %v3817_v7  ;;  %3661 = vmatmul.mubr.msk.bf16.gmra.mxu1 %vm945_vm1, %v3835_v14  ;;  %v3886_v63 = vld [vmem:[%s4944_s0 + $0x2f0] sm:$0xff]   ;;  %v3887_v1 = vld [vmem:[%s4944_s0 + $0x2f8] sm:$0xff]  }
  0x17   :  { %3532 = vmatprep.mubr.msk.bf16.mxu0 %vm945_vm1, %v3818_v8  ;;  %3664 = vmatprep.mubr.msk.bf16.mxu1 %vm945_vm1, %v3838_v15 }
  0x1e   :  { %3533 = vmatmul.mubr.msk.bf16.gmra.mxu0 %vm945_vm1, %v3819_v12  ;;  %3665 = vmatmul.mubr.msk.bf16.gmra.mxu1 %vm945_vm1, %v3839_v18 }
  0x1f   :  { %3536 = vmatprep.mubr.msk.bf16.mxu0 %vm945_vm1, %v3820_v13  ;;  %3668 = vmatprep.mubr.msk.bf16.mxu1 %vm945_vm1, %v3842_v19 }
  0x26   :  { %3537 = vmatmul.mubr.msk.bf16.gmra.mxu0 %vm945_vm1, %v3821_v16  ;;  %3669 = vmatmul.mubr.msk.bf16.gmra.mxu1 %vm945_vm1, %v3843_v22 }
  0x27   :  { %3540 = vmatprep.mubr.msk.bf16.mxu0 %vm945_vm1, %v3822_v17  ;;  %3672 = vmatprep.mubr.msk.bf16.mxu1 %vm945_vm1, %v3846_v23 }
  0x2e   :  { %3541 = vmatmul.mubr.msk.bf16.gmra.mxu0 %vm945_vm1, %v3823_v20  ;;  %3673 = vmatmul.mubr.msk.bf16.gmra.mxu1 %vm945_vm1, %v3847_v26 }
  0x2f   :  { %3544 = vmatprep.mubr.msk.bf16.mxu0 %vm945_vm1, %v3824_v21  ;;  %3676 = vmatprep.mubr.msk.bf16.mxu1 %vm945_vm1, %v3850_v27 }
  0x36   :  { %3545 = vmatmul.mubr.msk.bf16.gmra.mxu0 %vm945_vm1, %v3825_v24  ;;  %3677 = vmatmul.mubr.msk.bf16.gmra.mxu1 %vm945_vm1, %v3851_v30 }
  0x37   :  { %3548 = vmatprep.mubr.msk.bf16.mxu0 %vm945_vm1, %v3826_v25  ;;  %3680 = vmatprep.mubr.msk.bf16.mxu1 %vm945_vm1, %v3854_v31 }
  0x3e   :  { %3549 = vmatmul.mubr.msk.bf16.gmra.mxu0 %vm945_vm1, %v3827_v28  ;;  %3681 = vmatmul.mubr.msk.bf16.gmra.mxu1 %vm945_vm1, %v3855_v34 }
  0x3f   :  { %3552 = vmatprep.mubr.msk.bf16.mxu0 %vm945_vm1, %v3828_v29  ;;  %3684 = vmatprep.mubr.msk.bf16.mxu1 %vm945_vm1, %v3858_v35 }
  0x46   :  { %3553 = vmatmul.mubr.msk.bf16.gmra.mxu0 %vm945_vm1, %v3829_v32  ;;  %3685 = vmatmul.mubr.msk.bf16.gmra.mxu1 %vm945_vm1, %v3859_v38 }
  0x47   :  { %3556 = vmatprep.mubr.msk.bf16.mxu0 %vm945_vm1, %v3832_v33  ;;  %3688 = vmatprep.mubr.msk.bf16.mxu1 %vm945_vm1, %v3862_v39 }
  0x4e   :  { %3557 = vmatmul.mubr.msk.bf16.gmra.mxu0 %vm945_vm1, %v3833_v36  ;;  %3689 = vmatmul.mubr.msk.bf16.gmra.mxu1 %vm945_vm1, %v3863_v42 }
  0x4f   :  { %3560 = vmatprep.mubr.msk.bf16.mxu0 %vm945_vm1, %v3836_v37  ;;  %3692 = vmatprep.mubr.msk.bf16.mxu1 %vm945_vm1, %v3866_v43 }
  0x56   :  { %3561 = vmatmul.mubr.msk.bf16.gmra.mxu0 %vm945_vm1, %v3837_v40  ;;  %3693 = vmatmul.mubr.msk.bf16.gmra.mxu1 %vm945_vm1, %v3867_v46 }
  0x57   :  { %3564 = vmatprep.mubr.msk.bf16.mxu0 %vm945_vm1, %v3840_v41  ;;  %3696 = vmatprep.mubr.msk.bf16.mxu1 %vm945_vm1, %v3870_v47 }
  0x5e   :  { %3565 = vmatmul.mubr.msk.bf16.gmra.mxu0 %vm945_vm1, %v3841_v44  ;;  %3697 = vmatmul.mubr.msk.bf16.gmra.mxu1 %vm945_vm1, %v3871_v50 }
  0x5f   :  { %3568 = vmatprep.mubr.msk.bf16.mxu0 %vm945_vm1, %v3844_v45  ;;  %3700 = vmatprep.mubr.msk.bf16.mxu1 %vm945_vm1, %v3874_v51 }
  0x66   :  { %3569 = vmatmul.mubr.msk.bf16.gmra.mxu0 %vm945_vm1, %v3845_v48  ;;  %3701 = vmatmul.mubr.msk.bf16.gmra.mxu1 %vm945_vm1, %v3875_v53 }
  0x67   :  { %3572 = vmatprep.mubr.msk.bf16.mxu0 %vm945_vm1, %v3848_v49  ;;  %3704 = vmatprep.mubr.msk.bf16.mxu1 %vm945_vm1, %v3878_v55 }
  0x6e   :  { %3573 = vmatmul.mubr.msk.bf16.gmra.mxu0 %vm945_vm1, %v3849_v52  ;;  %3705 = vmatmul.mubr.msk.bf16.gmra.mxu1 %vm945_vm1, %v3879_v57 }
  0x6f   :  { %3576 = vmatprep.mubr.msk.bf16.mxu0 %vm945_vm1, %v3852_v54  ;;  %3708 = vmatprep.mubr.msk.bf16.mxu1 %vm945_vm1, %v3882_v59 }
  0x76   :  { %3577 = vmatmul.mubr.msk.bf16.gmra.mxu0 %vm945_vm1, %v3853_v56  ;;  %3709 = vmatmul.mubr.msk.bf16.gmra.mxu1 %vm945_vm1, %v3883_v61 }
  0x77   :  { %3580 = vmatprep.mubr.msk.bf16.mxu0 %vm945_vm1, %v3856_v58  ;;  %3712 = vmatprep.mubr.msk.bf16.mxu1 %vm945_vm1, %v3886_v63 }
  0x7e   :  { %3581 = vmatmul.mubr.msk.bf16.gmra.mxu0 %vm945_vm1, %v3857_v60 }
  0x7f   :  { %3584 = vmatprep.mubr.msk.bf16.mxu0 %vm945_vm1, %v3860_v62 }
  0x80   :  { %10 = vsyncpa [#allocation3], 0  ;;  %v3864_v2 = vld [vmem:[%s4944_s0 + $0x100] sm:$0xff]   ;;  %3713 = vmatmul.mubr.msk.bf16.gmra.mxu1 %vm945_vm1, %v3887_v1  ;;  %v3865_v4 = vld [vmem:[%s4944_s0 + $0x108] sm:$0xff]   ;;  %v3974_v33 = vmov 0.0   ;;  %vm2990_vm2 = vcmask 1041409  }
  0x81   :  { %v3890_v3 = vld [vmem:[%s4944_s0 + $0x300] sm:$0xff]   ;;  %v3891_v5 = vld [vmem:[%s4944_s0 + $0x308] sm:$0xff]   ;;  %v3868_v6 = vld [vmem:[%s4944_s0 + $0x110] sm:$0xff]   ;;  %3780 = vmatprep.subr.bf16.mxu1 %v3974_v33  ;;  %vm3975_vm3 = vmmov 0   ;;  %vm2992_vm4 = vcmask 1042434   ;;  %vm2994_vm5 = vcmask 1043459  }
  0x82   :  { %3716 = vmatprep.mubr.msk.bf16.mxu1 %vm945_vm1, %v3890_v3  ;;  %v3894_v7 = vld [vmem:[%s4944_s0 + $0x310] sm:$0xff]   ;;  %v3869_v8 = vld [vmem:[%s4944_s0 + $0x118] sm:$0xff]   ;;  %v3872_v10 = vld [vmem:[%s4944_s0 + $0x120] sm:$0xff]   ;;  %vm2996_vm6 = vcmask 1044484   ;;  %vm2998_vm7 = vcmask 1045509   ;;  %vm3000_vm8 = vcmask 1046534  }
  0x83   :  { %v3895_v9 = vld [vmem:[%s4944_s0 + $0x318] sm:$0xff]   ;;  %v3898_v11 = vld [vmem:[%s4944_s0 + $0x320] sm:$0xff]   ;;  %v3873_v12 = vld [vmem:[%s4944_s0 + $0x128] sm:$0xff]   ;;  %vm3002_vm9 = vcmask 1047559   ;;  %s3976_s15 = smov [#allocation2]  }
  0x84   :  { %v3899_v13 = vld [vmem:[%s4944_s0 + $0x328] sm:$0xff]   ;;  %v3876_v14 = vld [vmem:[%s4944_s0 + $0x130] sm:$0xff]   ;;  %v3877_v16 = vld [vmem:[%s4944_s0 + $0x138] sm:$0xff]   ;;  %s3101_s16 = sshll.u32 %s3976_s15, 4  ;;  %s3102_s16 = int_to_ptr.vmem [resolvable:$true] %s3101_s16 }
  0x85   :  { %v3902_v15 = vld [vmem:[%s4944_s0 + $0x330] sm:$0xff]   ;;  %v3903_v17 = vld [vmem:[%s4944_s0 + $0x338] sm:$0xff]   ;;  %v3880_v18 = vld [vmem:[%s4944_s0 + $0x140] sm:$0xff]   ;;  %s3952_s17 = scalar_lea.vmem %s3102_s16, 128  ;;  %p3957_p1 = scmp.lt.s32.totalorder %s3102_s16, %s3102_s16 }
  0x86   :  { %3585 = vmatmul.mubr.msk.bf16.gmra.mxu0 %vm945_vm1, %v3861_v0  ;;  %v3906_v19 = vld [vmem:[%s4944_s0 + $0x340] sm:$0xff]   ;;  %v3881_v20 = vld [vmem:[%s4944_s0 + $0x148] sm:$0xff]   ;;  %v3884_v22 = vld [vmem:[%s4944_s0 + $0x150] sm:$0xff]   ;;  %p3953_p0 = scmp.ne.s32.totalorder %s3102_s16, %s3952_s17  ;;  %p3958_p2 = scmp.lt.s32.totalorder %s3952_s17, %s3952_s17 }
  0x87   :  { %3588 = vmatprep.mubr.msk.bf16.mxu0 %vm945_vm1, %v3864_v2  ;;  %v3907_v21 = vld [vmem:[%s4944_s0 + $0x348] sm:$0xff]   ;;  %v3910_v23 = vld [vmem:[%s4944_s0 + $0x350] sm:$0xff]   ;;  %v3885_v24 = vld [vmem:[%s4944_s0 + $0x158] sm:$0xff]  }
  0x88   :  { %3717 = vmatmul.mubr.msk.bf16.gmra.mxu1 %vm945_vm1, %v3891_v5  ;;  %v3911_v25 = vld [vmem:[%s4944_s0 + $0x358] sm:$0xff]   ;;  %v3888_v26 = vld [vmem:[%s4944_s0 + $0x160] sm:$0xff]   ;;  %v3889_v28 = vld [vmem:[%s4944_s0 + $0x168] sm:$0xff]   ;;  %p3959_p3 = por %p3958_p2, %p3957_p1 }
  0x89   :  { %3720 = vmatprep.mubr.msk.bf16.mxu1 %vm945_vm1, %v3894_v7  ;;  %v3914_v27 = vld [vmem:[%s4944_s0 + $0x360] sm:$0xff]   ;;  %v3915_v29 = vld [vmem:[%s4944_s0 + $0x368] sm:$0xff]   ;;  %v3892_v30 = vld [vmem:[%s4944_s0 + $0x170] sm:$0xff]  }
  0x8a   :  { %v3918_v31 = vld [vmem:[%s4944_s0 + $0x370] sm:$0xff]   ;;  %v3940_v32 = vld [vmem:[%s4947_s3 + $0x38] sm:$0xff]   ;;  %v3896_v36 = vld [vmem:[%s4944_s0 + $0x180] sm:$0xff]   ;;  %p3960_p4 = pnand %p3959_p3, %p3953_p0 }
  0x8b   :  { %3781 = vmatpush3.bf16.msra.mxu1 %v3940_v32  ;;  %v3893_v34 = vld [vmem:[%s4944_s0 + $0x178] sm:$0xff]   ;;  %v3922_v37 = vld [vmem:[%s4944_s0 + $0x380] sm:$0xff]   ;;  %v3897_v38 = vld [vmem:[%s4944_s0 + $0x188] sm:$0xff]  }
  0x8c   :  { %3782 = vmatprep.subr.bf16.mxu1 %v3974_v33  ;;  %v3919_v35 = vld [vmem:[%s4944_s0 + $0x378] sm:$0xff]   ;;  %v3923_v39 = vld [vmem:[%s4944_s0 + $0x388] sm:$0xff]   ;;  %v3900_v40 = vld [vmem:[%s4944_s0 + $0x190] sm:$0xff]  }
  0x8d   :  { %v3926_v41 = vld [vmem:[%s4944_s0 + $0x390] sm:$0xff]   ;;  %v4424_v44 = vld [vmem:[%s4946_s2] ss:$0 sm:$0xff]  ;;  %v3901_v46 = vld [vmem:[%s4944_s0 + $0x198] sm:$0xff]  }
  0x8e   :  { %3589 = vmatmul.mubr.msk.bf16.gmra.mxu0 %vm945_vm1, %v3865_v4  ;;  %v3927_v47 = vld [vmem:[%s4944_s0 + $0x398] sm:$0xff]   ;;  %v3904_v49 = vld [vmem:[%s4944_s0 + $0x1a0] sm:$0xff]   ;;  %v3905_v1 = vld [vmem:[%s4944_s0 + $0x1a8] sm:$0xff]  }
  0x8f   :  { %3592 = vmatprep.mubr.msk.bf16.mxu0 %vm945_vm1, %v3868_v6  ;;  %v3930_v50 = vld [vmem:[%s4944_s0 + $0x3a0] sm:$0xff]   ;;  %v3931_v3 = vld [vmem:[%s4944_s0 + $0x3a8] sm:$0xff]   ;;  %v3908_v6 = vld [vmem:[%s4944_s0 + $0x1b0] sm:$0xff]  }
  0x90   :  { %3721 = vmatmul.mubr.msk.bf16.gmra.mxu1 %vm945_vm1, %v3895_v9  ;;  %v3932_v7 = vld [vmem:[%s4944_s0 + $0x3b0] sm:$0xff]  }
  0x91   :  { %3724 = vmatprep.mubr.msk.bf16.mxu1 %vm945_vm1, %v3898_v11 }
  0x96   :  { %3593 = vmatmul.mubr.msk.bf16.gmra.mxu0 %vm945_vm1, %v3869_v8 }
  0x97   :  { %3596 = vmatprep.mubr.msk.bf16.mxu0 %vm945_vm1, %v3872_v10 }
  0x98   :  { %3725 = vmatmul.mubr.msk.bf16.gmra.mxu1 %vm945_vm1, %v3899_v13 }
  0x99   :  { %3728 = vmatprep.mubr.msk.bf16.mxu1 %vm945_vm1, %v3902_v15 }
  0x9e   :  { %3597 = vmatmul.mubr.msk.bf16.gmra.mxu0 %vm945_vm1, %v3873_v12 }
  0x9f   :  { %3600 = vmatprep.mubr.msk.bf16.mxu0 %vm945_vm1, %v3876_v14 }
  0xa0   :  { %3729 = vmatmul.mubr.msk.bf16.gmra.mxu1 %vm945_vm1, %v3903_v17 }
  0xa1   :  { %3732 = vmatprep.mubr.msk.bf16.mxu1 %vm945_vm1, %v3906_v19 }
  0xa6   :  { %3601 = vmatmul.mubr.msk.bf16.gmra.mxu0 %vm945_vm1, %v3877_v16 }
  0xa7   :  { %3604 = vmatprep.mubr.msk.bf16.mxu0 %vm945_vm1, %v3880_v18 }
  0xa8   :  { %3733 = vmatmul.mubr.msk.bf16.gmra.mxu1 %vm945_vm1, %v3907_v21 }
  0xa9   :  { %3736 = vmatprep.mubr.msk.bf16.mxu1 %vm945_vm1, %v3910_v23 }
  0xae   :  { %3605 = vmatmul.mubr.msk.bf16.gmra.mxu0 %vm945_vm1, %v3881_v20 }
  0xaf   :  { %3608 = vmatprep.mubr.msk.bf16.mxu0 %vm945_vm1, %v3884_v22 }
  0xb0   :  { %3737 = vmatmul.mubr.msk.bf16.gmra.mxu1 %vm945_vm1, %v3911_v25  ;;  %v3909_v25 = vld [vmem:[%s4944_s0 + $0x1b8] sm:$0xff]  }
  0xb1   :  { %3740 = vmatprep.mubr.msk.bf16.mxu1 %vm945_vm1, %v3914_v27  ;;  %v3933_v27 = vld [vmem:[%s4944_s0 + $0x3b8] sm:$0xff]  }
  0xb6   :  { %3609 = vmatmul.mubr.msk.bf16.gmra.mxu0 %vm945_vm1, %v3885_v24 }
  0xb7   :  { %3612 = vmatprep.mubr.msk.bf16.mxu0 %vm945_vm1, %v3888_v26 }
  0xb8   :  { %3741 = vmatmul.mubr.msk.bf16.gmra.mxu1 %vm945_vm1, %v3915_v29 }
  0xb9   :  { %3744 = vmatprep.mubr.msk.bf16.mxu1 %vm945_vm1, %v3918_v31  ;;  %v3934_v31 = vld [vmem:[%s4944_s0 + $0x3c0] sm:$0xff]  }
  0xbe   :  { %3613 = vmatmul.mubr.msk.bf16.gmra.mxu0 %vm945_vm1, %v3889_v28 }
  0xbf   :  { %3616 = vmatprep.mubr.msk.bf16.mxu0 %vm945_vm1, %v3892_v30  ;;  %v3912_v30 = vld [vmem:[%s4944_s0 + $0x1c0] sm:$0xff]  }
  0xc0   :  { %3745 = vmatmul.mubr.msk.bf16.gmra.mxu1 %vm945_vm1, %v3919_v35 }
  0xc1   :  { %3748 = vmatprep.mubr.msk.bf16.mxu1 %vm945_vm1, %v3922_v37 }
  0xc6   :  { %3617 = vmatmul.mubr.msk.bf16.gmra.mxu0 %vm945_vm1, %v3893_v34 }
  0xc7   :  { %3620 = vmatprep.mubr.msk.bf16.mxu0 %vm945_vm1, %v3896_v36 }
  0xc8   :  { %3749 = vmatmul.mubr.msk.bf16.gmra.mxu1 %vm945_vm1, %v3923_v39 }
  0xc9   :  { %3752 = vmatprep.mubr.msk.bf16.mxu1 %vm945_vm1, %v3926_v41 }
  0xce   :  { %v3526_v42 = vpop.f32.mrf.mxu0  ;;  %3621 = vmatmul.mubr.msk.bf16.gmra.mxu0 %vm945_vm1, %v3897_v38  ;;  %v4442_v55 = vpop.f32.mrf.mxu1 }
  0xcf   :  { %3624 = vmatprep.mubr.msk.bf16.mxu0 %vm945_vm1, %v3900_v40  ;;  %v1377_v52 = vadd.f32 %v3526_v42, %v4424_v44 }
  0xd0   :  { %v1368_v43 = vpop.f32.mrf.mxu0  ;;  %3753 = vmatmul.mubr.msk.bf16.gmra.mxu1 %vm945_vm1, %v3927_v47  ;;  %v4448_v60 = vpop.f32.mrf.mxu1 }
  0xd1   :  { %v1369_v48 = vadd.f32 %v4424_v44, %v1368_v43  ;;  %3756 = vmatprep.mubr.msk.bf16.mxu1 %vm945_vm1, %v3930_v50  ;;  %v2393_v61 = vmax.f32 %v1377_v52, 0.0  ;;  %v3913_v52 = vld [vmem:[%s4944_s0 + $0x1c8] sm:$0xff]  }
  0xd2   :  { %v3527_v45 = vpop.f32.mrf.mxu0  ;;  %v4454_v2 = vpop.f32.mrf.mxu1 }
  0xd3   :  { %v2391_v56 = vmax.f32 %v1369_v48, 0.0  ;;  %v1380_v57 = vadd.f32 %v3527_v45, %v4424_v44  ;;  %v3943_v45 = vld [vmem:[%s4947_s3 + $0x30] sm:$0xff]  }
  0xd4   :  { %v1371_v51 = vpop.f32.mrf.mxu0  ;;  %v4465_v9 = vpop.f32.mrf.mxu1  ;;  %3783 = vmatpush3.bf16.msra.mxu1 %v3943_v45 }
  0xd5   :  { %v1372_v53 = vadd.f32 %v4424_v44, %v1371_v51  ;;  %v2394_v4 = vmax.f32 %v1380_v57, 0.0  ;;  %3784 = vmatprep.subr.bf16.mxu1 %v3974_v33 }
  0xd6   :  { %v3530_v54 = vpop.f32.mrf.mxu0  ;;  %3625 = vmatmul.mubr.msk.bf16.gmra.mxu0 %vm945_vm1, %v3901_v46  ;;  %v4470_v15 = vpop.f32.mrf.mxu1 }
  0xd7   :  { %v2392_v58 = vmax.f32 %v1372_v53, 0.0  ;;  %3628 = vmatprep.mubr.msk.bf16.mxu0 %vm945_vm1, %v3904_v49  ;;  %v1393_v10 = vadd.f32 %v3530_v54, %v4424_v44  ;;  %v3935_v54 = vld [vmem:[%s4944_s0 + $0x3c8] sm:$0xff]  }
  0xd8   :  { %v1384_v59 = vpop.f32.mrf.mxu0  ;;  %3757 = vmatmul.mubr.msk.bf16.gmra.mxu1 %vm945_vm1, %v3931_v3  ;;  %v4476_v20 = vpop.f32.mrf.mxu1 }
  0xd9   :  { %v2647_v62 = vadd.f32 %v2392_v58, %v2391_v56  ;;  %v1385_v63 = vadd.f32 %v4424_v44, %v1384_v59  ;;  %3760 = vmatprep.mubr.msk.bf16.mxu1 %vm945_vm1, %v3932_v7  ;;  %v2397_v21 = vmax.f32 %v1393_v10, 0.0  ;;  %v3916_v58 = vld [vmem:[%s4944_s0 + $0x1d0] sm:$0xff]  }
  0xda   :  { %v3531_v0 = vpop.f32.mrf.mxu0  ;;  %v4482_v26 = vpop.f32.mrf.mxu1  ;;  %v3936_v59 = vld [vmem:[%s4944_s0 + $0x3d0] sm:$0xff]  }
  0xdb   :  { %v2648_v5 = vadd.f32 %v2647_v62, %v2393_v61  ;;  %v2395_v11 = vmax.f32 %v1385_v63, 0.0  ;;  %v1396_v17 = vadd.f32 %v3531_v0, %v4424_v44 }
  0xdc   :  { %v1387_v8 = vpop.f32.mrf.mxu0  ;;  %v4493_v34 = vpop.f32.mrf.mxu1 }
  0xdd   :  { %v2649_v12 = vadd.f32 %v2648_v5, %v2394_v4  ;;  %v1388_v13 = vadd.f32 %v4424_v44, %v1387_v8  ;;  %v2398_v28 = vmax.f32 %v1396_v17, 0.0  ;;  %v3917_v17 = vld [vmem:[%s4944_s0 + $0x1d8] sm:$0xff]  }
  0xde   :  { %v3534_v14 = vpop.f32.mrf.mxu0  ;;  %3629 = vmatmul.mubr.msk.bf16.gmra.mxu0 %vm945_vm1, %v3905_v1  ;;  %v4498_v40 = vpop.f32.mrf.mxu1 }
  0xdf   :  { %v2650_v16 = vadd.f32 %v2649_v12, %v2395_v11  ;;  %v2396_v18 = vmax.f32 %v1388_v13, 0.0  ;;  %3632 = vmatprep.mubr.msk.bf16.mxu0 %vm945_vm1, %v3908_v6  ;;  %v1409_v35 = vadd.f32 %v3534_v14, %v4424_v44 }
  0xe0   :  { %v1400_v19 = vpop.f32.mrf.mxu0  ;;  %3761 = vmatmul.mubr.msk.bf16.gmra.mxu1 %vm945_vm1, %v3933_v27  ;;  %v4507_v47 = vpop.f32.mrf.mxu1 }
  0xe1   :  { %v2651_v22 = vadd.f32 %v2650_v16, %v2396_v18  ;;  %v1401_v23 = vadd.f32 %v4424_v44, %v1400_v19  ;;  %3764 = vmatprep.mubr.msk.bf16.mxu1 %vm945_vm1, %v3934_v31  ;;  %v2401_v48 = vmax.f32 %v1409_v35, 0.0  ;;  %v3937_v19 = vld [vmem:[%s4944_s0 + $0x3d8] sm:$0xff]  }
  0xe2   :  { %v3535_v24 = vpop.f32.mrf.mxu0  ;;  %v4513_v53 = vpop.f32.mrf.mxu1 }
  0xe3   :  { %v2652_v29 = vadd.f32 %v2651_v22, %v2397_v21  ;;  %v2399_v36 = vmax.f32 %v1401_v23, 0.0  ;;  %v1412_v42 = vadd.f32 %v3535_v24, %v4424_v44  ;;  %v3920_v23 = vld [vmem:[%s4944_s0 + $0x1e0] sm:$0xff]  }
  0xe4   :  { %v1403_v32 = vpop.f32.mrf.mxu0  ;;  %v4525_v62 = vpop.f32.mrf.mxu1  ;;  %v3938_v24 = vld [vmem:[%s4944_s0 + $0x3e0] sm:$0xff]  }
  0xe5   :  { %v2653_v37 = vadd.f32 %v2652_v29, %v2398_v28  ;;  %v1404_v38 = vadd.f32 %v4424_v44, %v1403_v32  ;;  %v2402_v56 = vmax.f32 %v1412_v42, 0.0 }
  0xe6   :  { %v3538_v39 = vpop.f32.mrf.mxu0  ;;  %3633 = vmatmul.mubr.msk.bf16.gmra.mxu0 %vm945_vm1, %v3909_v25  ;;  %v4530_v5 = vpop.f32.mrf.mxu1 }
  0xe7   :  { %v2654_v41 = vadd.f32 %v2653_v37, %v2399_v36  ;;  %v2400_v43 = vmax.f32 %v1404_v38, 0.0  ;;  %3636 = vmatprep.mubr.msk.bf16.mxu0 %vm945_vm1, %v3912_v30  ;;  %v1425_v63 = vadd.f32 %v3538_v39, %v4424_v44  ;;  %v3944_v39 = vld [vmem:[%s4947_s3 + $0x28] sm:$0xff]  }
  0xe8   :  { %v1416_v46 = vpop.f32.mrf.mxu0  ;;  %3765 = vmatmul.mubr.msk.bf16.gmra.mxu1 %vm945_vm1, %v3935_v54  ;;  %v4536_v11 = vpop.f32.mrf.mxu1 }
  0xe9   :  { %v2655_v49 = vadd.f32 %v2654_v41, %v2400_v43  ;;  %v1417_v50 = vadd.f32 %v4424_v44, %v1416_v46  ;;  %3768 = vmatprep.mubr.msk.bf16.mxu1 %vm945_vm1, %v3936_v59  ;;  %v2405_v12 = vmax.f32 %v1425_v63, 0.0  ;;  %3785 = vmatpush3.bf16.msra.mxu1 %v3944_v39 }
  0xea   :  { %v3539_v51 = vpop.f32.mrf.mxu0  ;;  %v4542_v18 = vpop.f32.mrf.mxu1  ;;  %3786 = vmatprep.subr.bf16.mxu1 %v3974_v33 }
  0xeb   :  { %v2656_v57 = vadd.f32 %v2655_v49, %v2401_v48  ;;  %v2403_v0 = vmax.f32 %v1417_v50, 0.0  ;;  %v1428_v7 = vadd.f32 %v3539_v51, %v4424_v44  ;;  %v3921_v49 = vld [vmem:[%s4944_s0 + $0x1e8] sm:$0xff]  }
  0xec   :  { %v1419_v61 = vpop.f32.mrf.mxu0  ;;  %v4553_v27 = vpop.f32.mrf.mxu1  ;;  %v3939_v51 = vld [vmem:[%s4944_s0 + $0x3e8] sm:$0xff]  }
  0xed   :  { %v2657_v1 = vadd.f32 %v2656_v57, %v2402_v56  ;;  %v1420_v3 = vadd.f32 %v4424_v44, %v1419_v61  ;;  %v2406_v21 = vmax.f32 %v1428_v7, 0.0  ;;  %v3924_v56 = vld [vmem:[%s4944_s0 + $0x1f0] sm:$0xff]  }
  0xee   :  { %v3542_v4 = vpop.f32.mrf.mxu0  ;;  %3637 = vmatmul.mubr.msk.bf16.gmra.mxu0 %vm945_vm1, %v3913_v52  ;;  %v4558_v35 = vpop.f32.mrf.mxu1  ;;  %v3941_v57 = vld [vmem:[%s4944_s0 + $0x3f0] sm:$0xff]  }
  0xef   :  { %v2658_v6 = vadd.f32 %v2657_v1, %v2403_v0  ;;  %v2404_v8 = vmax.f32 %v1420_v3, 0.0  ;;  %3640 = vmatprep.mubr.msk.bf16.mxu0 %vm945_vm1, %v3916_v58  ;;  %v1441_v28 = vadd.f32 %v3542_v4, %v4424_v44 }
  0xf0   :  { %v1432_v10 = vpop.f32.mrf.mxu0  ;;  %3769 = vmatmul.mubr.msk.bf16.gmra.mxu1 %vm945_vm1, %v3937_v19  ;;  %v4567_v42 = vpop.f32.mrf.mxu1  ;;  %v3925_v19 = vld [vmem:[%s4944_s0 + $0x1f8] sm:$0xff]  }
  0xf1   :  { %v2659_v13 = vadd.f32 %v2658_v6, %v2404_v8  ;;  %v1433_v14 = vadd.f32 %v4424_v44, %v1432_v10  ;;  %3772 = vmatprep.mubr.msk.bf16.mxu1 %vm945_vm1, %v3938_v24  ;;  %v2409_v43 = vmax.f32 %v1441_v28, 0.0 }
  0xf2   :  { %v3543_v16 = vpop.f32.mrf.mxu0  ;;  %v4573_v50 = vpop.f32.mrf.mxu1 }
  0xf3   :  { %v2660_v22 = vadd.f32 %v2659_v13, %v2405_v12  ;;  %v2407_v29 = vmax.f32 %v1433_v14, 0.0  ;;  %v1444_v37 = vadd.f32 %v3543_v16, %v4424_v44 }
  0xf4   :  { %v1435_v25 = vpop.f32.mrf.mxu0  ;;  %v4585_v59 = vpop.f32.mrf.mxu1 }
  0xf5   :  { %v2661_v30 = vadd.f32 %v2660_v22, %v2406_v21  ;;  %v1436_v31 = vadd.f32 %v4424_v44, %v1435_v25  ;;  %v2410_v52 = vmax.f32 %v1444_v37, 0.0  ;;  %v3942_v22 = vld [vmem:[%s4944_s0 + $0x3f8] sm:$0xff]   ;;  %v3928_v25 = vld [vmem:[%s4944_s0 + $0x200] sm:$0xff]  }
  0xf6   :  { %v3546_v32 = vpop.f32.mrf.mxu0  ;;  %3641 = vmatmul.mubr.msk.bf16.gmra.mxu0 %vm945_vm1, %v3917_v17  ;;  %v4590_v4 = vpop.f32.mrf.mxu1 }
  0xf7   :  { %v2662_v36 = vadd.f32 %v2661_v30, %v2407_v29  ;;  %v2408_v38 = vmax.f32 %v1436_v31, 0.0  ;;  %3644 = vmatprep.mubr.msk.bf16.mxu0 %vm945_vm1, %v3920_v23  ;;  %v1457_v61 = vadd.f32 %v3546_v32, %v4424_v44 }
  0xf8   :  { %v1448_v41 = vpop.f32.mrf.mxu0  ;;  %3773 = vmatmul.mubr.msk.bf16.gmra.mxu1 %vm945_vm1, %v3939_v51  ;;  %v4596_v12 = vpop.f32.mrf.mxu1 }
  0xf9   :  { %v2663_v45 = vadd.f32 %v2662_v36, %v2408_v38  ;;  %v1449_v46 = vadd.f32 %v4424_v44, %v1448_v41  ;;  %3776 = vmatprep.mubr.msk.bf16.mxu1 %vm945_vm1, %v3941_v57  ;;  %v2413_v13 = vmax.f32 %v1457_v61, 0.0 }
  0xfa   :  { %v3547_v48 = vpop.f32.mrf.mxu0  ;;  %v4602_v21 = vpop.f32.mrf.mxu1 }
  0xfb   :  { %v2664_v54 = vadd.f32 %v2663_v45, %v2409_v43  ;;  %v2411_v63 = vmax.f32 %v1449_v46, 0.0  ;;  %v1460_v7 = vadd.f32 %v3547_v48, %v4424_v44 }
  0xfc   :  { %v1451_v58 = vpop.f32.mrf.mxu0  ;;  %v4610_v29 = vpop.f32.mrf.mxu1 }
  0xfd   :  { %v2665_v0 = vadd.f32 %v2664_v54, %v2410_v52  ;;  %v1452_v1 = vadd.f32 %v4424_v44, %v1451_v58  ;;  %v2414_v23 = vmax.f32 %v1460_v7, 0.0  ;;  %v3929_v54 = vld [vmem:[%s4944_s0 + $0x208] sm:$0xff]  }
  0xfe   :  { %v3550_v3 = vpop.f32.mrf.mxu0  ;;  %3645 = vmatmul.mubr.msk.bf16.gmra.mxu0 %vm945_vm1, %v3921_v49  ;;  %v4615_v38 = vpop.f32.mrf.mxu1 }
  0xff   :  { %v2666_v6 = vadd.f32 %v2665_v0, %v2411_v63  ;;  %v2412_v8 = vmax.f32 %v1452_v1, 0.0  ;;  %3648 = vmatprep.mubr.msk.bf16.mxu0 %vm945_vm1, %v3924_v56  ;;  %v1473_v30 = vadd.f32 %v3550_v3, %v4424_v44 }
 0x100   :  { %v1464_v10 = vpop.f32.mrf.mxu0  ;;  %3777 = vmatmul.mubr.msk.bf16.gmra.mxu1 %vm945_vm1, %v3942_v22  ;;  %v4620_v46 = vpop.f32.mrf.mxu1 }
 0x101   :  { %v2667_v14 = vadd.f32 %v2666_v6, %v2412_v8  ;;  %v1465_v16 = vadd.f32 %v4424_v44, %v1464_v10  ;;  %v2417_v48 = vmax.f32 %v1473_v30, 0.0  ;;  %3796 = vmatprep.mubr.msk.bf16.mxu1 %vm3975_vm3, %v3974_v33 }
 0x102   :  { %v3551_v17 = vpop.f32.mrf.mxu0  ;;  %v4626_v56 = vpop.f32.mrf.mxu1 }
 0x103   :  { %v2668_v24 = vadd.f32 %v2667_v14, %v2413_v13  ;;  %v2415_v31 = vmax.f32 %v1465_v16, 0.0  ;;  %v1476_v41 = vadd.f32 %v3551_v17, %v4424_v44 }
 0x104   :  { %v1467_v28 = vpop.f32.mrf.mxu0  ;;  %v4628_v63 = vpop.f32.mrf.mxu1 }
 0x105   :  { %v2669_v32 = vadd.f32 %v2668_v24, %v2414_v23  ;;  %v1468_v36 = vadd.f32 %v4424_v44, %v1467_v28  ;;  %v2418_v57 = vmax.f32 %v1476_v41, 0.0 }
 0x106   :  { %v3554_v37 = vpop.f32.mrf.mxu0  ;;  %3649 = vmatmul.mubr.msk.bf16.gmra.mxu0 %vm945_vm1, %v3925_v19  ;;  %v3686_v8 = vpop.f32.mrf.mxu1 }
 0x107   :  { %v2670_v39 = vadd.f32 %v2669_v32, %v2415_v31  ;;  %v2416_v43 = vmax.f32 %v1468_v36, 0.0  ;;  %3652 = vmatprep.mubr.msk.bf16.mxu0 %vm945_vm1, %v3928_v25  ;;  %v1489_v0 = vadd.f32 %v3554_v37, %v4424_v44  ;;  %v2017_v36 = vadd.f32 %v3686_v8, %v4424_v44 }
 0x108   :  { %v1480_v45 = vpop.f32.mrf.mxu0  ;;  %v2008_v17 = vpop.f32.mrf.mxu1 }
 0x109   :  { %v2671_v49 = vadd.f32 %v2670_v39, %v2416_v43  ;;  %v1481_v51 = vadd.f32 %v4424_v44, %v1480_v45  ;;  %v2421_v19 = vmax.f32 %v1489_v0, 0.0  ;;  %v2009_v24 = vadd.f32 %v4424_v44, %v2008_v17 }
 0x10a   :  { %v3555_v52 = vpop.f32.mrf.mxu0  ;;  %v3687_v25 = vpop.f32.mrf.mxu1  ;;  %v2553_v0 = vmax.f32 %v2017_v36, 0.0 }
 0x10b   :  { %v2672_v58 = vadd.f32 %v2671_v49, %v2417_v48  ;;  %v2419_v1 = vmax.f32 %v1481_v51, 0.0  ;;  %v1492_v13 = vadd.f32 %v3555_v52, %v4424_v44  ;;  %v2551_v48 = vmax.f32 %v2009_v24, 0.0 }
 0x10c   :  { %v1483_v61 = vpop.f32.mrf.mxu0  ;;  %v2011_v37 = vpop.f32.mrf.mxu1  ;;  %v2020_v49 = vadd.f32 %v3687_v25, %v4424_v44 }
 0x10d   :  { %v2673_v3 = vadd.f32 %v2672_v58, %v2418_v57  ;;  %v1484_v6 = vadd.f32 %v4424_v44, %v1483_v61  ;;  %v2422_v28 = vmax.f32 %v1492_v13, 0.0  ;;  %v2012_v51 = vadd.f32 %v4424_v44, %v2011_v37 }
 0x10e   :  { %v3558_v7 = vpop.f32.mrf.mxu0  ;;  %3653 = vmatmul.mubr.msk.bf16.gmra.mxu0 %vm945_vm1, %v3929_v54  ;;  %v3690_v52 = vpop.f32.mrf.mxu1  ;;  %v2554_v13 = vmax.f32 %v2020_v49, 0.0 }
 0x10f   :  { %v2674_v10 = vadd.f32 %v2673_v3, %v2419_v1  ;;  %v2420_v14 = vmax.f32 %v1484_v6, 0.0  ;;  %v1505_v41 = vadd.f32 %v3558_v7, %v4424_v44  ;;  %v2552_v1 = vmax.f32 %v2012_v51, 0.0 }
 0x110   :  { %v1496_v16 = vpop.f32.mrf.mxu0  ;;  %v2024_v3 = vpop.f32.mrf.mxu1 }
 0x111   :  { %v2675_v22 = vadd.f32 %v2674_v10, %v2420_v14  ;;  %v1497_v31 = vadd.f32 %v4424_v44, %v1496_v16  ;;  %v2425_v6 = vmax.f32 %v1505_v41, 0.0  ;;  %v2832_v14 = vadd.f32 %v2552_v1, %v2551_v48 }
 0x112   :  { %v3559_v23 = vpop.f32.mrf.mxu0  ;;  %v2025_v16 = vadd.f32 %v4424_v44, %v2024_v3  ;;  %v3691_v17 = vpop.f32.mrf.mxu1 }
 0x113   :  { %v2676_v30 = vadd.f32 %v2675_v22, %v2421_v19  ;;  %v2423_v54 = vmax.f32 %v1497_v31, 0.0  ;;  %v1508_v57 = vadd.f32 %v3559_v23, %v4424_v44  ;;  %v2833_v25 = vadd.f32 %v2832_v14, %v2553_v0 }
 0x114   :  { %v1499_v32 = vpop.f32.mrf.mxu0  ;;  %v2033_v23 = vadd.f32 %v3690_v52, %v4424_v44  ;;  %v2036_v48 = vadd.f32 %v3691_v17, %v4424_v44 }
 0x115   :  { %v4637_v39 = vadd.f32 %v2676_v30, %v2422_v28  ;;  %v1500_v43 = vadd.f32 %v4424_v44, %v1499_v32  ;;  %v2426_v19 = vmax.f32 %v1508_v57, 0.0  ;;  %v2555_v28 = vmax.f32 %v2025_v16, 0.0  ;;  %v2027_v30 = vpop.f32.mrf.mxu1 }
 0x116   :  { %v3562_v45 = vpop.f32.mrf.mxu0  ;;  %v2028_v49 = vadd.f32 %v4424_v44, %v2027_v30 }
 0x117   :  { %v2424_v58 = vmax.f32 %v1500_v43, 0.0  ;;  %v1521_v31 = vadd.f32 %v3562_v45, %v4424_v44  ;;  %v2834_v43 = vadd.f32 %v2833_v25, %v2554_v13  ;;  %v3694_v51 = vpop.f32.mrf.mxu1  ;;  %v2558_v13 = vmax.f32 %v2036_v48, 0.0 }
 0x118   :  { %v1512_v61 = vpop.f32.mrf.mxu0  ;;  %v2556_v1 = vmax.f32 %v2028_v49, 0.0  ;;  %v2049_v25 = vadd.f32 %v3694_v51, %v4424_v44  ;;  %v3945_v51 = vld [vmem:[%s4947_s3 + $0x20] sm:$0xff]  }
 0x119   :  { %v2684_v8 = vadd.f32 %v2424_v58, %v2423_v54  ;;  %v1513_v7 = vadd.f32 %v4424_v44, %v1512_v61  ;;  %v2557_v61 = vmax.f32 %v2033_v23, 0.0  ;;  %v2835_v0 = vadd.f32 %v2834_v43, %v2555_v28  ;;  %v2040_v45 = vpop.f32.mrf.mxu1  ;;  %3787 = vmatpush3.bf16.msra.mxu1 %v3945_v51 }
 0x11a   :  { %v3563_v10 = vpop.f32.mrf.mxu0  ;;  %v2429_v3 = vmax.f32 %v1521_v31, 0.0  ;;  %v2041_v16 = vadd.f32 %v4424_v44, %v2040_v45  ;;  %3788 = vmatprep.subr.bf16.mxu1 %v3974_v33 }
 0x11b   :  { %v2685_v22 = vadd.f32 %v2684_v8, %v2425_v6  ;;  %v2427_v32 = vmax.f32 %v1513_v7, 0.0  ;;  %v1524_v57 = vadd.f32 %v3563_v10, %v4424_v44  ;;  %v2836_v14 = vadd.f32 %v2835_v0, %v2556_v1  ;;  %v3695_v17 = vpop.f32.mrf.mxu1 }
 0x11c   :  { %v1515_v24 = vpop.f32.mrf.mxu0  ;;  %v2559_v23 = vmax.f32 %v2041_v16, 0.0  ;;  %v2052_v48 = vadd.f32 %v3695_v17, %v4424_v44 }
 0x11d   :  { %v2686_v36 = vadd.f32 %v2685_v22, %v2426_v19  ;;  %v1516_v37 = vadd.f32 %v4424_v44, %v1515_v24  ;;  %v2430_v19 = vmax.f32 %v1524_v57, 0.0  ;;  %v2837_v10 = vadd.f32 %v2836_v14, %v2557_v61  ;;  %v2043_v28 = vpop.f32.mrf.mxu1 }
 0x11e   :  { %v3566_v41 = vpop.f32.mrf.mxu0  ;;  %v2044_v49 = vadd.f32 %v4424_v44, %v2043_v28  ;;  %v2561_v61 = vmax.f32 %v2049_v25, 0.0  ;;  %v2562_v14 = vmax.f32 %v2052_v48, 0.0 }
 0x11f   :  { %v2687_v54 = vadd.f32 %v2686_v36, %v2427_v32  ;;  %v2428_v58 = vmax.f32 %v1516_v37, 0.0  ;;  %v1537_v30 = vadd.f32 %v3566_v41, %v4424_v44  ;;  %v2838_v43 = vadd.f32 %v2837_v10, %v2558_v13 }
 0x120   :  { %v1528_v52 = vpop.f32.mrf.mxu0  ;;  %v2560_v1 = vmax.f32 %v2044_v49, 0.0 }
 0x121   :  { %v2688_v6 = vadd.f32 %v2687_v54, %v2428_v58  ;;  %v1529_v8 = vadd.f32 %v4424_v44, %v1528_v52  ;;  %v3698_v54 = vpop.f32.mrf.mxu1  ;;  %v2839_v0 = vadd.f32 %v2838_v43, %v2559_v23 }
 0x122   :  { %v3567_v7 = vpop.f32.mrf.mxu0  ;;  %v2065_v25 = vadd.f32 %v3698_v54, %v4424_v44 }
 0x123   :  { %v2689_v22 = vadd.f32 %v2688_v6, %v2429_v3  ;;  %v2431_v31 = vmax.f32 %v1529_v8, 0.0  ;;  %v1540_v58 = vadd.f32 %v3567_v7, %v4424_v44  ;;  %v2056_v45 = vpop.f32.mrf.mxu1  ;;  %v2433_v3 = vmax.f32 %v1537_v30, 0.0 }
 0x124   :  { %v1531_v24 = vpop.f32.mrf.mxu0  ;;  %v2840_v16 = vadd.f32 %v2839_v0, %v2560_v1  ;;  %v2057_v7 = vadd.f32 %v4424_v44, %v2056_v45 }
 0x125   :  { %v2690_v32 = vadd.f32 %v2689_v22, %v2430_v19  ;;  %v1532_v36 = vadd.f32 %v4424_v44, %v1531_v24  ;;  %v3699_v17 = vpop.f32.mrf.mxu1  ;;  %v2434_v19 = vmax.f32 %v1540_v58, 0.0 }
 0x126   :  { %v3570_v37 = vpop.f32.mrf.mxu0  ;;  %v2841_v10 = vadd.f32 %v2840_v16, %v2561_v61  ;;  %v2563_v23 = vmax.f32 %v2057_v7, 0.0  ;;  %v2068_v49 = vadd.f32 %v3699_v17, %v4424_v44  ;;  %v2565_v61 = vmax.f32 %v2065_v25, 0.0 }
 0x127   :  { %v2691_v57 = vadd.f32 %v2690_v32, %v2431_v31  ;;  %v2432_v52 = vmax.f32 %v1532_v36, 0.0  ;;  %v2059_v28 = vpop.f32.mrf.mxu1  ;;  %v1553_v30 = vadd.f32 %v3570_v37, %v4424_v44 }
 0x128   :  { %v1544_v41 = vpop.f32.mrf.mxu0  ;;  %v2842_v48 = vadd.f32 %v2841_v10, %v2562_v14  ;;  %v2566_v14 = vmax.f32 %v2068_v49, 0.0 }
 0x129   :  { %v2692_v6 = vadd.f32 %v2691_v57, %v2432_v52  ;;  %v1545_v8 = vadd.f32 %v4424_v44, %v1544_v41  ;;  %v2060_v57 = vadd.f32 %v4424_v44, %v2059_v28  ;;  %v3702_v58 = vpop.f32.mrf.mxu1  ;;  %v2437_v45 = vmax.f32 %v1553_v30, 0.0 }
 0x12a   :  { %v3571_v13 = vpop.f32.mrf.mxu0  ;;  %v2843_v0 = vadd.f32 %v2842_v48, %v2563_v23  ;;  %v2081_v10 = vadd.f32 %v3702_v58, %v4424_v44  ;;  %v3946_v58 = vld [vmem:[%s4947_s3 + $0x18] sm:$0xff]  }
 0x12b   :  { %v2693_v22 = vadd.f32 %v2692_v6, %v2433_v3  ;;  %v2435_v31 = vmax.f32 %v1545_v8, 0.0  ;;  %v1556_v51 = vadd.f32 %v3571_v13, %v4424_v44  ;;  %v2564_v1 = vmax.f32 %v2060_v57, 0.0  ;;  %v2072_v37 = vpop.f32.mrf.mxu1  ;;  %3789 = vmatpush3.bf16.msra.mxu1 %v3946_v58 }
 0x12c   :  { %v1547_v24 = vpop.f32.mrf.mxu0  ;;  %v2073_v7 = vadd.f32 %v4424_v44, %v2072_v37  ;;  %3790 = vmatprep.subr.bf16.mxu1 %v3974_v33 }
 0x12d   :  { %v2694_v32 = vadd.f32 %v2693_v22, %v2434_v19  ;;  %v1548_v36 = vadd.f32 %v4424_v44, %v1547_v24  ;;  %v2844_v16 = vadd.f32 %v2843_v0, %v2564_v1  ;;  %v3703_v17 = vpop.f32.mrf.mxu1  ;;  %v2438_v19 = vmax.f32 %v1556_v51, 0.0 }
 0x12e   :  { %v3574_v43 = vpop.f32.mrf.mxu0  ;;  %v2567_v25 = vmax.f32 %v2073_v7, 0.0  ;;  %v2084_v49 = vadd.f32 %v3703_v17, %v4424_v44 }
 0x12f   :  { %v2695_v52 = vadd.f32 %v2694_v32, %v2435_v31  ;;  %v2436_v41 = vmax.f32 %v1548_v36, 0.0  ;;  %v2845_v13 = vadd.f32 %v2844_v16, %v2565_v61  ;;  %v2075_v23 = vpop.f32.mrf.mxu1  ;;  %v1569_v28 = vadd.f32 %v3574_v43, %v4424_v44 }
 0x130   :  { %v1560_v54 = vpop.f32.mrf.mxu0  ;;  %v2076_v57 = vadd.f32 %v4424_v44, %v2075_v23  ;;  %v2569_v61 = vmax.f32 %v2081_v10, 0.0  ;;  %v2570_v16 = vmax.f32 %v2084_v49, 0.0 }
 0x131   :  { %v2696_v3 = vadd.f32 %v2695_v52, %v2436_v41  ;;  %v1561_v6 = vadd.f32 %v4424_v44, %v1560_v54  ;;  %v2846_v48 = vadd.f32 %v2845_v13, %v2566_v14  ;;  %v3706_v52 = vpop.f32.mrf.mxu1 }
 0x132   :  { %v3575_v8 = vpop.f32.mrf.mxu0  ;;  %v2568_v1 = vmax.f32 %v2076_v57, 0.0  ;;  %v2097_v10 = vadd.f32 %v3706_v52, %v4424_v44 }
 0x133   :  { %v2697_v22 = vadd.f32 %v2696_v3, %v2437_v45  ;;  %v2439_v30 = vmax.f32 %v1561_v6, 0.0  ;;  %v1572_v41 = vadd.f32 %v3575_v8, %v4424_v44  ;;  %v2847_v0 = vadd.f32 %v2846_v48, %v2567_v25  ;;  %v2088_v37 = vpop.f32.mrf.mxu1 }
 0x134   :  { %v1563_v24 = vpop.f32.mrf.mxu0  ;;  %v2441_v45 = vmax.f32 %v1569_v28, 0.0  ;;  %v2089_v8 = vadd.f32 %v4424_v44, %v2088_v37 }
 0x135   :  { %v2698_v31 = vadd.f32 %v2697_v22, %v2438_v19  ;;  %v1564_v32 = vadd.f32 %v4424_v44, %v1563_v24  ;;  %v2848_v7 = vadd.f32 %v2847_v0, %v2568_v1  ;;  %v3707_v17 = vpop.f32.mrf.mxu1  ;;  %v2442_v19 = vmax.f32 %v1572_v41, 0.0 }
 0x136   :  { %v3578_v36 = vpop.f32.mrf.mxu0  ;;  %v2571_v25 = vmax.f32 %v2089_v8, 0.0  ;;  %v2100_v57 = vadd.f32 %v3707_v17, %v4424_v44 }
 0x137   :  { %v2699_v51 = vadd.f32 %v2698_v31, %v2439_v30  ;;  %v2440_v54 = vmax.f32 %v1564_v32, 0.0  ;;  %v2849_v13 = vadd.f32 %v2848_v7, %v2569_v61  ;;  %v2091_v23 = vpop.f32.mrf.mxu1  ;;  %v1585_v28 = vadd.f32 %v3578_v36, %v4424_v44 }
 0x138   :  { %v1576_v43 = vpop.f32.mrf.mxu0  ;;  %v2573_v61 = vmax.f32 %v2097_v10, 0.0 }
 0x139   :  { %v2700_v3 = vadd.f32 %v2699_v51, %v2440_v54  ;;  %v1577_v6 = vadd.f32 %v4424_v44, %v1576_v43  ;;  %v2850_v49 = vadd.f32 %v2849_v13, %v2570_v16  ;;  %v2092_v51 = vadd.f32 %v4424_v44, %v2091_v23  ;;  %v3710_v41 = vpop.f32.mrf.mxu1 }
 0x13a   :  { %v3579_v14 = vpop.f32.mrf.mxu0  ;;  %v2445_v37 = vmax.f32 %v1585_v28, 0.0  ;;  %v2574_v16 = vmax.f32 %v2100_v57, 0.0  ;;  %v2113_v10 = vadd.f32 %v3710_v41, %v4424_v44 }
 0x13b   :  { %v2701_v22 = vadd.f32 %v2700_v3, %v2441_v45  ;;  %v2443_v30 = vmax.f32 %v1577_v6, 0.0  ;;  %v1588_v58 = vadd.f32 %v3579_v14, %v4424_v44  ;;  %v2851_v0 = vadd.f32 %v2850_v49, %v2571_v25  ;;  %v2104_v36 = vpop.f32.mrf.mxu1 }
 0x13c   :  { %v1579_v24 = vpop.f32.mrf.mxu0  ;;  %v2572_v1 = vmax.f32 %v2092_v51, 0.0  ;;  %v2105_v8 = vadd.f32 %v4424_v44, %v2104_v36  ;;  %v2678_v14 = vrot.slane %v4637_v39, 4 }
 0x13d   :  { %v2702_v31 = vadd.f32 %v2701_v22, %v2442_v19  ;;  %v1580_v32 = vadd.f32 %v4424_v44, %v1579_v24  ;;  %v3711_v17 = vpop.f32.mrf.mxu1  ;;  %v2446_v19 = vmax.f32 %v1588_v58, 0.0 }
 0x13e   :  { %v3582_v48 = vpop.f32.mrf.mxu0  ;;  %v2852_v7 = vadd.f32 %v2851_v0, %v2572_v1  ;;  %v2575_v25 = vmax.f32 %v2105_v8, 0.0  ;;  %v2116_v51 = vadd.f32 %v3711_v17, %v4424_v44  ;;  %v2679_v41 = vadd.f32 %v2678_v14, %v4637_v39 }
 0x13f   :  { %v2703_v54 = vadd.f32 %v2702_v31, %v2443_v30  ;;  %v2444_v43 = vmax.f32 %v1580_v32, 0.0  ;;  %v2107_v23 = vpop.f32.mrf.mxu1  ;;  %v1601_v28 = vadd.f32 %v3582_v48, %v4424_v44  ;;  %v2577_v1 = vmax.f32 %v2113_v10, 0.0 }
 0x140   :  { %v1592_v52 = vpop.f32.mrf.mxu0  ;;  %v2853_v13 = vadd.f32 %v2852_v7, %v2573_v61  ;;  %v2578_v8 = vmax.f32 %v2116_v51, 0.0 }
 0x141   :  { %v2704_v45 = vadd.f32 %v2703_v54, %v2444_v43  ;;  %v1593_v3 = vadd.f32 %v4424_v44, %v1592_v52  ;;  %v2108_v54 = vadd.f32 %v4424_v44, %v2107_v23  ;;  %v3714_v58 = vpop.f32.mrf.mxu1 }
 0x142   :  { %v3583_v6 = vpop.f32.mrf.mxu0  ;;  %v2854_v57 = vadd.f32 %v2853_v13, %v2574_v16  ;;  %v2680_v13 = vrot.slane %v2679_v41, 2  ;;  %v2129_v14 = vadd.f32 %v3714_v58, %v4424_v44 }
 0x143   :  { %v2705_v22 = vadd.f32 %v2704_v45, %v2445_v37  ;;  %v2447_v30 = vmax.f32 %v1593_v3, 0.0  ;;  %v1604_v52 = vadd.f32 %v3583_v6, %v4424_v44  ;;  %v2576_v36 = vmax.f32 %v2108_v54, 0.0  ;;  %v2120_v37 = vpop.f32.mrf.mxu1 }
 0x144   :  { %v1595_v24 = vpop.f32.mrf.mxu0  ;;  %v2855_v48 = vadd.f32 %v2854_v57, %v2575_v25  ;;  %v2449_v45 = vmax.f32 %v1601_v28, 0.0 }
 0x145   :  { %v2706_v31 = vadd.f32 %v2705_v22, %v2446_v19  ;;  %v1596_v32 = vadd.f32 %v4424_v44, %v1595_v24  ;;  %v2121_v19 = vadd.f32 %v4424_v44, %v2120_v37  ;;  %v3715_v22 = vpop.f32.mrf.mxu1  ;;  %v2450_v24 = vmax.f32 %v1604_v52, 0.0 }
 0x146   :  { %v3586_v49 = vpop.f32.mrf.mxu0  ;;  %v2856_v17 = vadd.f32 %v2855_v48, %v2576_v36  ;;  %v2132_v54 = vadd.f32 %v3715_v22, %v4424_v44  ;;  %v2581_v48 = vmax.f32 %v2129_v14, 0.0 }
 0x147   :  { %v2707_v43 = vadd.f32 %v2706_v31, %v2447_v30  ;;  %v2448_v61 = vmax.f32 %v1596_v32, 0.0  ;;  %v2579_v10 = vmax.f32 %v2121_v19, 0.0  ;;  %v2123_v25 = vpop.f32.mrf.mxu1  ;;  %v1617_v28 = vadd.f32 %v3586_v49, %v4424_v44 }
 0x148   :  { %v1608_v0 = vpop.f32.mrf.mxu0  ;;  %v2857_v39 = vadd.f32 %v2856_v17, %v2577_v1  ;;  %v2582_v19 = vmax.f32 %v2132_v54, 0.0 }
 0x149   :  { %v2708_v3 = vadd.f32 %v2707_v43, %v2448_v61  ;;  %v1609_v16 = vadd.f32 %v4424_v44, %v1608_v0  ;;  %v2124_v43 = vadd.f32 %v4424_v44, %v2123_v25  ;;  %v3718_v52 = vpop.f32.mrf.mxu1 }
 0x14a   :  { %v3587_v7 = vpop.f32.mrf.mxu0  ;;  %v2858_v51 = vadd.f32 %v2857_v39, %v2578_v8  ;;  %v2145_v14 = vadd.f32 %v3718_v52, %v4424_v44 }
 0x14b   :  { %v2709_v6 = vadd.f32 %v2708_v3, %v2449_v45  ;;  %v2451_v30 = vmax.f32 %v1609_v16, 0.0  ;;  %v1620_v0 = vadd.f32 %v3587_v7, %v4424_v44  ;;  %v2580_v37 = vmax.f32 %v2124_v43, 0.0  ;;  %v2136_v49 = vpop.f32.mrf.mxu1 }
 0x14c   :  { %v1611_v23 = vpop.f32.mrf.mxu0  ;;  %v2859_v36 = vadd.f32 %v2858_v51, %v2579_v10  ;;  %v2681_v45 = vadd.f32 %v2680_v13, %v2679_v41  ;;  %v2453_v3 = vmax.f32 %v1617_v28, 0.0  ;;  %v2137_v22 = vadd.f32 %v4424_v44, %v2136_v49 }
 0x14d   :  { %v2710_v31 = vadd.f32 %v2709_v6, %v2450_v24  ;;  %v1612_v32 = vadd.f32 %v4424_v44, %v1611_v23  ;;  %v3719_v24 = vpop.f32.mrf.mxu1  ;;  %v2454_v6 = vmax.f32 %v1620_v0, 0.0 }
 0x14e   :  { %v3590_v57 = vpop.f32.mrf.mxu0  ;;  %v2860_v8 = vadd.f32 %v2859_v36, %v2580_v37  ;;  %v2583_v51 = vmax.f32 %v2137_v22, 0.0  ;;  %v2148_v54 = vadd.f32 %v3719_v24, %v4424_v44  ;;  %v2585_v36 = vmax.f32 %v2145_v14, 0.0 }
 0x14f   :  { %v2711_v61 = vadd.f32 %v2710_v31, %v2451_v30  ;;  %v2452_v1 = vmax.f32 %v1612_v32, 0.0  ;;  %v2139_v10 = vpop.f32.mrf.mxu1  ;;  %v2682_v30 = vrot.slane %v2681_v45, 1  ;;  %v1633_v41 = vadd.f32 %v3590_v57, %v4424_v44 }
 0x150   :  { %v1624_v58 = vpop.f32.mrf.mxu0  ;;  %v2861_v25 = vadd.f32 %v2860_v8, %v2581_v48  ;;  %v2140_v43 = vadd.f32 %v4424_v44, %v2139_v10  ;;  %v2586_v24 = vmax.f32 %v2148_v54, 0.0 }
 0x151   :  { %v2712_v16 = vadd.f32 %v2711_v61, %v2452_v1  ;;  %v1625_v39 = vadd.f32 %v4424_v44, %v1624_v58  ;;  %v3722_v61 = vpop.f32.mrf.mxu1  ;;  %v2683_v8 = vadd.f32 %v2682_v30, %v2681_v45 }
 0x152   :  { %v3591_v17 = vpop.f32.mrf.mxu0  ;;  %v4715_v32 = vadd.f32 %v2861_v25, %v2582_v19  ;;  %v2584_v37 = vmax.f32 %v2140_v43, 0.0 }
 0x153   :  { %v2713_v23 = vadd.f32 %v2712_v16, %v2453_v3  ;;  %v2455_v1 = vmax.f32 %v1625_v39, 0.0  ;;  %v1636_v52 = vadd.f32 %v3591_v17, %v4424_v44  ;;  %v2152_v57 = vpop.f32.mrf.mxu1  ;;  %v2457_v3 = vmax.f32 %v1633_v41, 0.0 }
 0x154   :  { %v1627_v7 = vpop.f32.mrf.mxu0 }
 0x155   :  { %v2714_v31 = vadd.f32 %v2713_v23, %v2454_v6  ;;  %v1628_v13 = vadd.f32 %v4424_v44, %v1627_v7  ;;  %v2869_v6 = vadd.f32 %v2584_v37, %v2583_v51  ;;  %v4724_v23 = vld [vmem:[%s4946_s2] ss:$0 sm:$0xff]  ;;  %v3723_v39 = vpop.f32.mrf.mxu1  ;;  %v2458_v25 = vmax.f32 %v1636_v52, 0.0 }
 0x156   :  { %v3594_v28 = vpop.f32.mrf.mxu0  ;;  %v2153_v17 = vadd.f32 %v4724_v23, %v2152_v57 }
 0x157   :  { %v2715_v0 = vrot.slane %v2714_v31, 4  ;;  %v2456_v58 = vmax.f32 %v1628_v13, 0.0  ;;  %v1649_v10 = vadd.f32 %v4724_v23, %v3594_v28  ;;  %v2870_v41 = vadd.f32 %v2869_v6, %v2585_v36  ;;  %v2155_v30 = vpop.f32.mrf.mxu1 }
 0x158   :  { %v1640_v48 = vpop.f32.mrf.mxu0  ;;  %v2587_v45 = vmax.f32 %v2153_v17, 0.0  ;;  %v2156_v52 = vadd.f32 %v4724_v23, %v2155_v30 }
 0x159   :  { %v2716_v49 = vadd.f32 %v2715_v0, %v2714_v31  ;;  %v2721_v16 = vadd.f32 %v2456_v58, %v2455_v1  ;;  %v1641_v19 = vadd.f32 %v4424_v44, %v1640_v48  ;;  %v2161_v44 = vadd.f32 %v4724_v23, %v3722_v61  ;;  %v3726_v37 = vpop.f32.mrf.mxu1 }
 0x15a   :  { %v3595_v22 = vpop.f32.mrf.mxu0  ;;  %v2943_v0 = vpack.c.bf16 %v2683_v8, %v2683_v8  ;;  %v2871_v58 = vadd.f32 %v2870_v41, %v2586_v24  ;;  %v2164_v48 = vadd.f32 %v4724_v23, %v3723_v39 }
 0x15b   :  { %v2717_v7 = vrot.slane %v2716_v49, 2  ;;  %v2722_v14 = vadd.f32 %v2721_v16, %v2457_v3  ;;  %v2459_v51 = vmax.f32 %v1641_v19, 0.0  ;;  %v1652_v36 = vadd.f32 %v4724_v23, %v3595_v22  ;;  %v2168_v6 = vpop.f32.mrf.mxu1 }
 0x15c   :  { %v1643_v31 = vpop.f32.mrf.mxu0  ;;  %v2589_v16 = vmax.f32 %v2161_v44, 0.0  ;;  %v2588_v19 = vmax.f32 %v2156_v52, 0.0  ;;  %v2982_v30 = vunpack.c.l.b16 %v2943_v0 }
 0x15d   :  { %v2718_v13 = vadd.f32 %v2717_v7, %v2716_v49  ;;  %v2723_v54 = vadd.f32 %v2722_v14, %v2458_v25  ;;  %v1644_v43 = vadd.f32 %v4724_v23, %v1643_v31  ;;  %v2872_v49 = vadd.f32 %v2871_v58, %v2587_v45  ;;  %v3727_v41 = vpop.f32.mrf.mxu1 }
 0x15e   :  { %v3598_v1 = vpop.f32.mrf.mxu0  ;;  %v2461_v7 = vmax.f32 %v1649_v10, 0.0  ;;  %v2590_v25 = vmax.f32 %v2164_v48, 0.0  ;;  %v2169_v31 = vadd.f32 %v4724_v23, %v2168_v6  ;;  %v2177_v10 = vadd.f32 %v4724_v23, %v3726_v37  ;;  %v3947_v6 = vld [vmem:[%s4947_s3 + $0x10] sm:$0xff]  }
 0x15f   :  { %v2719_v28 = vrot.slane %v2718_v13, 1  ;;  %v2724_v57 = vadd.f32 %v2723_v54, %v2459_v51  ;;  %v2460_v61 = vmax.f32 %v1644_v43, 0.0  ;;  %v2873_v14 = vadd.f32 %v2872_v49, %v2588_v19  ;;  %v2171_v58 = vpop.f32.mrf.mxu1  ;;  %3791 = vmatpush3.bf16.msra.mxu1 %v3947_v6 }
 0x160   :  { %v1656_v3 = vpop.f32.mrf.mxu0  ;;  %v2462_v51 = vmax.f32 %v1652_v36, 0.0  ;;  %v1665_v44 = vadd.f32 %v4724_v23, %v3598_v1  ;;  %v2180_v0 = vadd.f32 %v4724_v23, %v3727_v41  ;;  %v2172_v36 = vadd.f32 %v4724_v23, %v2171_v58  ;;  %3792 = vmatprep.subr.bf16.mxu1 %v3974_v33 }
 0x161   :  { %v2720_v17 = vadd.f32 %v2719_v28, %v2718_v13  ;;  %v2725_v8 = vadd.f32 %v2724_v57, %v2460_v61  ;;  %v1657_v24 = vadd.f32 %v4724_v23, %v1656_v3  ;;  %v2874_v43 = vadd.f32 %v2873_v14, %v2589_v16  ;;  %v3730_v49 = vpop.f32.mrf.mxu1 }
 0x162   :  { %v3599_v39 = vpop.f32.mrf.mxu0  ;;  %v2591_v13 = vmax.f32 %v2169_v31, 0.0  ;;  %v2465_v14 = vmax.f32 %v1665_v44, 0.0  ;;  %v2193_v44 = vadd.f32 %v4724_v23, %v3730_v49 }
 0x163   :  { %v2944_v22 = vpack.c.bf16 %v2720_v17, %v2720_v17  ;;  %v2726_v54 = vadd.f32 %v2725_v8, %v2461_v7  ;;  %v2463_v28 = vmax.f32 %v1657_v24, 0.0  ;;  %v2875_v3 = vadd.f32 %v2874_v43, %v2590_v25  ;;  %v2184_v25 = vpop.f32.mrf.mxu1 }
 0x164   :  { %v1659_v45 = vpop.f32.mrf.mxu0  ;;  %v1668_v37 = vadd.f32 %v4724_v23, %v3599_v39  ;;  %v2593_v7 = vmax.f32 %v2177_v10, 0.0  ;;  %v2592_v24 = vmax.f32 %v2172_v36, 0.0  ;;  %v2597_v49 = vmax.f32 %v2193_v44, 0.0 }
 0x165   :  { %v2983_v52 = vunpack.c.l.b16 %v2944_v22  ;;  %v2727_v57 = vadd.f32 %v2726_v54, %v2462_v51  ;;  %v1660_v48 = vadd.f32 %v4724_v23, %v1659_v45  ;;  %v2876_v8 = vadd.f32 %v2875_v3, %v2591_v13  ;;  %v3731_v54 = vpop.f32.mrf.mxu1 }
 0x166   :  { %v3602_v61 = vpop.f32.mrf.mxu0  ;;  %v2594_v51 = vmax.f32 %v2180_v0, 0.0  ;;  %v2466_v45 = vmax.f32 %v1668_v37, 0.0 }
 0x167   :  { %v4741_v1 = vsel %vm2990_vm2, %v2983_v52, %v2982_v30  ;;  %v2728_v16 = vadd.f32 %v2727_v57, %v2463_v28  ;;  %v2464_v19 = vmax.f32 %v1660_v48, 0.0  ;;  %v2185_v30 = vadd.f32 %v4724_v23, %v2184_v25  ;;  %v2187_v28 = vpop.f32.mrf.mxu1 }
 0x168   :  { %v1672_v17 = vpop.f32.mrf.mxu0  ;;  %v2877_v39 = vadd.f32 %v2876_v8, %v2592_v24  ;;  %v1681_v10 = vadd.f32 %v4724_v23, %v3602_v61  ;;  %v2188_v0 = vadd.f32 %v4724_v23, %v2187_v28 }
 0x169   :  { %v2729_v31 = vadd.f32 %v2728_v16, %v2464_v19  ;;  %v1673_v41 = vadd.f32 %v4724_v23, %v1672_v17  ;;  %v2595_v52 = vmax.f32 %v2185_v30, 0.0  ;;  %v2196_v19 = vadd.f32 %v4724_v23, %v3731_v54  ;;  %v3734_v37 = vpop.f32.mrf.mxu1 }
 0x16a   :  { %v3603_v22 = vpop.f32.mrf.mxu0  ;;  %v2878_v58 = vadd.f32 %v2877_v39, %v2593_v7  ;;  %v2596_v7 = vmax.f32 %v2188_v0, 0.0  ;;  %v2209_v44 = vadd.f32 %v4724_v23, %v3734_v37 }
 0x16b   :  { %v2730_v43 = vadd.f32 %v2729_v31, %v2465_v14  ;;  %v2467_v57 = vmax.f32 %v1673_v41, 0.0  ;;  %v1684_v61 = vadd.f32 %v4724_v23, %v3603_v22  ;;  %v2200_v25 = vpop.f32.mrf.mxu1  ;;  %v2469_v14 = vmax.f32 %v1681_v10, 0.0 }
 0x16c   :  { %v1675_v13 = vpop.f32.mrf.mxu0  ;;  %v2879_v16 = vadd.f32 %v2878_v58, %v2594_v51  ;;  %v2201_v30 = vadd.f32 %v4724_v23, %v2200_v25  ;;  %v2598_v51 = vmax.f32 %v2196_v19, 0.0  ;;  %v2601_v37 = vmax.f32 %v2209_v44, 0.0 }
 0x16d   :  { %v2731_v48 = vadd.f32 %v2730_v43, %v2466_v45  ;;  %v1676_v3 = vadd.f32 %v4724_v23, %v1675_v13  ;;  %v3735_v54 = vpop.f32.mrf.mxu1  ;;  %v2470_v43 = vmax.f32 %v1684_v61, 0.0 }
 0x16e   :  { %v3606_v36 = vpop.f32.mrf.mxu0  ;;  %v2880_v24 = vadd.f32 %v2879_v16, %v2595_v52  ;;  %v2599_v52 = vmax.f32 %v2201_v30, 0.0 }
 0x16f   :  { %v2732_v6 = vadd.f32 %v2731_v48, %v2467_v57  ;;  %v2468_v17 = vmax.f32 %v1676_v3, 0.0  ;;  %v1697_v22 = vadd.f32 %v4724_v23, %v3606_v36  ;;  %v2203_v57 = vpop.f32.mrf.mxu1 }
 0x170   :  { %v1688_v8 = vpop.f32.mrf.mxu0  ;;  %v2881_v45 = vadd.f32 %v2880_v24, %v2596_v7  ;;  %v2204_v0 = vadd.f32 %v4724_v23, %v2203_v57 }
 0x171   :  { %v2733_v31 = vadd.f32 %v2732_v6, %v2468_v17  ;;  %v1689_v41 = vadd.f32 %v4724_v23, %v1688_v8  ;;  %v2212_v6 = vadd.f32 %v4724_v23, %v3735_v54  ;;  %v3738_v61 = vpop.f32.mrf.mxu1 }
 0x172   :  { %v3607_v39 = vpop.f32.mrf.mxu0  ;;  %v2882_v28 = vadd.f32 %v2881_v45, %v2597_v49  ;;  %v2600_v8 = vmax.f32 %v2204_v0, 0.0  ;;  %v2225_v44 = vadd.f32 %v4724_v23, %v3738_v61 }
 0x173   :  { %v2734_v13 = vadd.f32 %v2733_v31, %v2469_v14  ;;  %v2471_v10 = vmax.f32 %v1689_v41, 0.0  ;;  %v1700_v36 = vadd.f32 %v4724_v23, %v3607_v39  ;;  %v2216_v25 = vpop.f32.mrf.mxu1  ;;  %v2473_v14 = vmax.f32 %v1697_v22, 0.0 }
 0x174   :  { %v1691_v58 = vpop.f32.mrf.mxu0  ;;  %v2883_v19 = vadd.f32 %v2882_v28, %v2598_v51  ;;  %v2217_v30 = vadd.f32 %v4724_v23, %v2216_v25  ;;  %v2602_v51 = vmax.f32 %v2212_v6, 0.0  ;;  %v2605_v61 = vmax.f32 %v2225_v44, 0.0 }
 0x175   :  { %v2735_v48 = vadd.f32 %v2734_v13, %v2470_v43  ;;  %v1692_v3 = vadd.f32 %v4724_v23, %v1691_v58  ;;  %v3739_v54 = vpop.f32.mrf.mxu1  ;;  %v2474_v13 = vmax.f32 %v1700_v36, 0.0 }
 0x176   :  { %v3610_v16 = vpop.f32.mrf.mxu0  ;;  %v2884_v24 = vadd.f32 %v2883_v19, %v2599_v52  ;;  %v2603_v52 = vmax.f32 %v2217_v30, 0.0 }
 0x177   :  { %v2736_v17 = vadd.f32 %v2735_v48, %v2471_v10  ;;  %v2472_v7 = vmax.f32 %v1692_v3, 0.0  ;;  %v1713_v39 = vadd.f32 %v4724_v23, %v3610_v16  ;;  %v2219_v10 = vpop.f32.mrf.mxu1 }
 0x178   :  { %v1704_v49 = vpop.f32.mrf.mxu0  ;;  %v2885_v43 = vadd.f32 %v2884_v24, %v2600_v8  ;;  %v2220_v0 = vadd.f32 %v4724_v23, %v2219_v10 }
 0x179   :  { %v2737_v31 = vadd.f32 %v2736_v17, %v2472_v7  ;;  %v1705_v41 = vadd.f32 %v4724_v23, %v1704_v49  ;;  %v2228_v17 = vadd.f32 %v4724_v23, %v3739_v54  ;;  %v3742_v36 = vpop.f32.mrf.mxu1 }
 0x17a   :  { %v3611_v45 = vpop.f32.mrf.mxu0  ;;  %v2886_v57 = vadd.f32 %v2885_v43, %v2601_v37  ;;  %v2604_v49 = vmax.f32 %v2220_v0, 0.0  ;;  %v2241_v44 = vadd.f32 %v4724_v23, %v3742_v36  ;;  %v3948_v36 = vld [vmem:[%s4947_s3 + $0x8] sm:$0xff]  }
 0x17b   :  { %v2738_v58 = vadd.f32 %v2737_v31, %v2473_v14  ;;  %v2475_v22 = vmax.f32 %v1705_v41, 0.0  ;;  %v1716_v16 = vadd.f32 %v4724_v23, %v3611_v45  ;;  %v2232_v25 = vpop.f32.mrf.mxu1  ;;  %v2477_v14 = vmax.f32 %v1713_v39, 0.0  ;;  %3793 = vmatpush3.bf16.msra.mxu1 %v3948_v36 }
 0x17c   :  { %v1707_v28 = vpop.f32.mrf.mxu0  ;;  %v2887_v6 = vadd.f32 %v2886_v57, %v2602_v51  ;;  %v2233_v30 = vadd.f32 %v4724_v23, %v2232_v25  ;;  %v2606_v51 = vmax.f32 %v2228_v17, 0.0  ;;  %3794 = vmatprep.subr.bf16.mxu1 %v3974_v33 }
 0x17d   :  { %v2739_v48 = vadd.f32 %v2738_v58, %v2474_v13  ;;  %v1708_v3 = vadd.f32 %v4724_v23, %v1707_v28  ;;  %v3743_v54 = vpop.f32.mrf.mxu1  ;;  %v2478_v58 = vmax.f32 %v1716_v16, 0.0 }
 0x17e   :  { %v3614_v19 = vpop.f32.mrf.mxu0  ;;  %v2888_v24 = vadd.f32 %v2887_v6, %v2603_v52  ;;  %v2607_v52 = vmax.f32 %v2233_v30, 0.0 }
 0x17f   :  { %v2740_v7 = vadd.f32 %v2739_v48, %v2475_v22  ;;  %v2476_v8 = vmax.f32 %v1708_v3, 0.0  ;;  %v1729_v45 = vadd.f32 %v4724_v23, %v3614_v19  ;;  %v2235_v22 = vpop.f32.mrf.mxu1 }
 0x180   :  { %v1720_v37 = vpop.f32.mrf.mxu0  ;;  %v2889_v13 = vadd.f32 %v2888_v24, %v2604_v49  ;;  %v2236_v0 = vadd.f32 %v4724_v23, %v2235_v22  ;;  %v2609_v24 = vmax.f32 %v2241_v44, 0.0 }
 0x181   :  { %v2741_v31 = vadd.f32 %v2740_v7, %v2476_v8  ;;  %v1721_v41 = vadd.f32 %v4724_v23, %v1720_v37  ;;  %v2244_v7 = vadd.f32 %v4724_v23, %v3743_v54  ;;  %v3746_v16 = vpop.f32.mrf.mxu1 }
 0x182   :  { %v3615_v43 = vpop.f32.mrf.mxu0  ;;  %v2890_v10 = vadd.f32 %v2889_v13, %v2605_v61  ;;  %v2608_v37 = vmax.f32 %v2236_v0, 0.0  ;;  %v2257_v22 = vadd.f32 %v4724_v23, %v3746_v16 }
 0x183   :  { %v2742_v28 = vadd.f32 %v2741_v31, %v2477_v14  ;;  %v2479_v39 = vmax.f32 %v1721_v41, 0.0  ;;  %v1732_v19 = vadd.f32 %v4724_v23, %v3615_v43  ;;  %v2248_v14 = vpop.f32.mrf.mxu1  ;;  %v2481_v31 = vmax.f32 %v1729_v45, 0.0  ;;  %v3949_v43 = vld [vmem:[%s4947_s3] sm:$0xff]  }
 0x184   :  { %v1723_v57 = vpop.f32.mrf.mxu0  ;;  %v2891_v17 = vadd.f32 %v2890_v10, %v2606_v51  ;;  %v2249_v51 = vadd.f32 %v4724_v23, %v2248_v14  ;;  %v2610_v54 = vmax.f32 %v2244_v7, 0.0  ;;  %3795 = vmatpush3.bf16.msra.mxu1 %v3949_v43 }
 0x185   :  { %v2743_v48 = vadd.f32 %v2742_v28, %v2478_v58  ;;  %v1724_v3 = vadd.f32 %v4724_v23, %v1723_v57  ;;  %v3747_v28 = vpop.f32.mrf.mxu1  ;;  %v2482_v45 = vmax.f32 %v1732_v19, 0.0 }
 0x186   :  { %v3618_v6 = vpop.f32.mrf.mxu0  ;;  %v2892_v25 = vadd.f32 %v2891_v17, %v2607_v52  ;;  %v2260_v33 = vadd.f32 %v4724_v23, %v3747_v28 }
 0x187   :  { %v2744_v8 = vadd.f32 %v2743_v48, %v2479_v39  ;;  %v2480_v49 = vmax.f32 %v1724_v3, 0.0  ;;  %v1745_v10 = vadd.f32 %v4724_v23, %v3618_v6  ;;  %v2611_v39 = vmax.f32 %v2249_v51, 0.0  ;;  %v2251_v48 = vpop.f32.mrf.mxu1 }
 0x188   :  { %v1736_v61 = vpop.f32.mrf.mxu0  ;;  %v2893_v58 = vadd.f32 %v2892_v25, %v2608_v37  ;;  %v2252_v7 = vadd.f32 %v4724_v23, %v2251_v48  ;;  %v2614_v43 = vmax.f32 %v2260_v33, 0.0 }
 0x189   :  { %v2745_v41 = vadd.f32 %v2744_v8, %v2480_v49  ;;  %v1737_v30 = vadd.f32 %v4724_v23, %v1736_v61  ;;  %v3750_v19 = vpop.f32.mrf.mxu1 }
 0x18a   :  { %v3619_v13 = vpop.f32.mrf.mxu0  ;;  %v2894_v52 = vadd.f32 %v2893_v58, %v2609_v24  ;;  %v2612_v61 = vmax.f32 %v2252_v7, 0.0  ;;  %v2613_v24 = vmax.f32 %v2257_v22, 0.0 }
 0x18b   :  { %v2746_v57 = vadd.f32 %v2745_v41, %v2481_v31  ;;  %v2483_v3 = vmax.f32 %v1737_v30, 0.0  ;;  %v1748_v6 = vadd.f32 %v4724_v23, %v3619_v13  ;;  %v2264_v14 = vpop.f32.mrf.mxu1  ;;  %v2485_v31 = vmax.f32 %v1745_v10, 0.0 }
 0x18c   :  { %v1739_v44 = vpop.f32.mrf.mxu0  ;;  %v2895_v49 = vadd.f32 %v2894_v52, %v2610_v54  ;;  %v2265_v54 = vadd.f32 %v4724_v23, %v2264_v14  ;;  %v2273_v52 = vadd.f32 %v4724_v23, %v3750_v19 }
 0x18d   :  { %v2747_v0 = vadd.f32 %v2746_v57, %v2482_v45  ;;  %v1740_v17 = vadd.f32 %v4724_v23, %v1739_v44  ;;  %v3751_v28 = vpop.f32.mrf.mxu1  ;;  %v2486_v45 = vmax.f32 %v1748_v6, 0.0 }
 0x18e   :  { %v3622_v8 = vpop.f32.mrf.mxu0  ;;  %v2896_v25 = vadd.f32 %v2895_v49, %v2611_v39  ;;  %v2615_v49 = vmax.f32 %v2265_v54, 0.0  ;;  %v2276_v33 = vadd.f32 %v4724_v23, %v3751_v28 }
 0x18f   :  { %v2748_v37 = vadd.f32 %v2747_v0, %v2483_v3  ;;  %v2484_v36 = vmax.f32 %v1740_v17, 0.0  ;;  %v2267_v48 = vpop.f32.mrf.mxu1  ;;  %v1761_v39 = vadd.f32 %v4724_v23, %v3622_v8 }
 0x190   :  { %v1752_v16 = vpop.f32.mrf.mxu0  ;;  %v2897_v58 = vadd.f32 %v2896_v25, %v2612_v61  ;;  %v2268_v3 = vadd.f32 %v4724_v23, %v2267_v48 }
 0x191   :  { %v2749_v41 = vadd.f32 %v2748_v37, %v2484_v36  ;;  %v1753_v30 = vadd.f32 %v4724_v23, %v1752_v16  ;;  %v3754_v37 = vpop.f32.mrf.mxu1  ;;  %v2489_v14 = vmax.f32 %v1761_v39, 0.0 }
 0x192   :  { %v3623_v51 = vpop.f32.mrf.mxu0  ;;  %v2898_v13 = vadd.f32 %v2897_v58, %v2613_v24  ;;  %v2616_v61 = vmax.f32 %v2268_v3, 0.0  ;;  %v2617_v24 = vmax.f32 %v2273_v52, 0.0  ;;  %v2289_v52 = vadd.f32 %v4724_v23, %v3754_v37 }
 0x193   :  { %v2750_v57 = vadd.f32 %v2749_v41, %v2485_v31  ;;  %v2487_v0 = vmax.f32 %v1753_v30, 0.0  ;;  %v1764_v36 = vadd.f32 %v4724_v23, %v3623_v51  ;;  %v2280_v8 = vpop.f32.mrf.mxu1 }
 0x194   :  { %v1755_v44 = vpop.f32.mrf.mxu0  ;;  %v4802_v7 = vadd.f32 %v2898_v13, %v2614_v43  ;;  %v2618_v43 = vmax.f32 %v2276_v33, 0.0  ;;  %v2906_v58 = vadd.f32 %v2616_v61, %v2615_v49  ;;  %v2281_v54 = vadd.f32 %v4724_v23, %v2280_v8 }
 0x195   :  { %v2751_v22 = vadd.f32 %v2750_v57, %v2486_v45  ;;  %v1756_v10 = vadd.f32 %v4724_v23, %v1755_v44  ;;  %v3755_v28 = vpop.f32.mrf.mxu1  ;;  %v2490_v57 = vmax.f32 %v1764_v36, 0.0 }
 0x196   :  { %v3626_v17 = vpop.f32.mrf.mxu0  ;;  %v2907_v48 = vadd.f32 %v2906_v58, %v2617_v24 }
 0x197   :  { %v2752_v6 = vrot.slane %v2751_v22, 4  ;;  %v2488_v19 = vmax.f32 %v1756_v10, 0.0  ;;  %v1777_v51 = vadd.f32 %v4724_v23, %v3626_v17  ;;  %v2283_v39 = vpop.f32.mrf.mxu1 }
 0x198   :  { %v1768_v16 = vpop.f32.mrf.mxu0 }
 0x199   :  { %v2753_v25 = vadd.f32 %v2752_v6, %v2751_v22  ;;  %v2758_v31 = vadd.f32 %v2488_v19, %v2487_v0  ;;  %v1769_v41 = vadd.f32 %v4724_v23, %v1768_v16  ;;  %v2619_v22 = vmax.f32 %v2281_v54, 0.0  ;;  %v3758_v61 = vpop.f32.mrf.mxu1 }
 0x19a   :  { %v3627_v30 = vpop.f32.mrf.mxu0  ;;  %v2908_v6 = vadd.f32 %v2907_v48, %v2618_v43  ;;  %v2284_v19 = vadd.f32 %v4724_v23, %v2283_v39  ;;  %v2493_v54 = vmax.f32 %v1777_v51, 0.0 }
 0x19b   :  { %v2754_v45 = vrot.slane %v2753_v25, 2  ;;  %v2759_v44 = vadd.f32 %v2758_v31, %v2489_v14  ;;  %v2491_v3 = vmax.f32 %v1769_v41, 0.0  ;;  %v1780_v17 = vadd.f32 %v4724_v23, %v3627_v30  ;;  %v2296_v41 = vpop.f32.mrf.mxu1 }
 0x19c   :  { %v1771_v13 = vpop.f32.mrf.mxu0  ;;  %v2621_v14 = vmax.f32 %v2289_v52, 0.0  ;;  %v2909_v37 = vadd.f32 %v2908_v6, %v2619_v22  ;;  %v2292_v31 = vadd.f32 %v4724_v23, %v3755_v28  ;;  %v2297_v28 = vadd.f32 %v4724_v23, %v2296_v41 }
 0x19d   :  { %v2755_v10 = vadd.f32 %v2754_v45, %v2753_v25  ;;  %v2760_v0 = vadd.f32 %v2759_v44, %v2490_v57  ;;  %v1772_v33 = vadd.f32 %v4724_v23, %v1771_v13  ;;  %v2620_v25 = vmax.f32 %v2284_v19, 0.0  ;;  %v3759_v13 = vpop.f32.mrf.mxu1 }
 0x19e   :  { %v3630_v49 = vpop.f32.mrf.mxu0  ;;  %v2494_v39 = vmax.f32 %v1780_v17, 0.0  ;;  %v2622_v22 = vmax.f32 %v2292_v31, 0.0 }
 0x19f   :  { %v2756_v36 = vrot.slane %v2755_v10, 1  ;;  %v2761_v16 = vadd.f32 %v2760_v0, %v2491_v3  ;;  %v2492_v8 = vmax.f32 %v1772_v33, 0.0  ;;  %v2910_v44 = vadd.f32 %v2909_v37, %v2620_v25  ;;  %v2299_v19 = vpop.f32.mrf.mxu1 }
 0x1a0   :  { %v1784_v24 = vpop.f32.mrf.mxu0  ;;  %v1793_v3 = vadd.f32 %v4724_v23, %v3630_v49  ;;  %v2623_v37 = vmax.f32 %v2297_v28, 0.0 }
 0x1a1   :  { %v2757_v58 = vadd.f32 %v2756_v36, %v2755_v10  ;;  %v2762_v45 = vadd.f32 %v2761_v16, %v2492_v8  ;;  %v1785_v43 = vadd.f32 %v4724_v23, %v1784_v24  ;;  %v2911_v0 = vadd.f32 %v2910_v44, %v2621_v14 }
 0x1a2   :  { %v3631_v57 = vpop.f32.mrf.mxu0  ;;  %v2300_v14 = vadd.f32 %v4724_v23, %v2299_v19  ;;  %v2497_v25 = vmax.f32 %v1793_v3, 0.0 }
 0x1a3   :  { %v2945_v48 = vpack.c.bf16 %v2757_v58, %v2757_v58  ;;  %v2763_v30 = vadd.f32 %v2762_v45, %v2493_v54  ;;  %v2495_v10 = vmax.f32 %v1785_v43, 0.0  ;;  %v1796_v17 = vadd.f32 %v4724_v23, %v3631_v57  ;;  %v3762_v54 = vpop.f32.mrf.mxu1 }
 0x1a4   :  { %v1787_v52 = vpop.f32.mrf.mxu0  ;;  %v2912_v31 = vadd.f32 %v2911_v0, %v2622_v22 }
 0x1a5   :  { %v2984_v33 = vunpack.c.l.b16 %v2945_v48  ;;  %v2764_v51 = vadd.f32 %v2763_v30, %v2494_v39  ;;  %v1788_v6 = vadd.f32 %v4724_v23, %v1787_v52  ;;  %v2498_v43 = vmax.f32 %v1796_v17, 0.0  ;;  %v2312_v0 = vpop.f32.mrf.mxu1 }
 0x1a6   :  { %v3634_v36 = vpop.f32.mrf.mxu0  ;;  %v2913_v39 = vadd.f32 %v2912_v31, %v2623_v37  ;;  %v2624_v30 = vmax.f32 %v2300_v14, 0.0 }
 0x1a7   :  { %v4819_v16 = vsel %vm2992_vm4, %v2984_v33, %v4741_v1  ;;  %v2765_v8 = vadd.f32 %v2764_v51, %v2495_v10  ;;  %v2496_v24 = vmax.f32 %v1788_v6, 0.0  ;;  %v2305_v1 = vadd.f32 %v4724_v23, %v3758_v61 }
 0x1a8   :  { %v1800_v49 = vpop.f32.mrf.mxu0  ;;  %v1809_v57 = vadd.f32 %v4724_v23, %v3634_v36  ;;  %v2914_v17 = vadd.f32 %v2913_v39, %v2624_v30  ;;  %v3763_v36 = vpop.f32.mrf.mxu1 }
 0x1a9   :  { %v2766_v41 = vadd.f32 %v2765_v8, %v2496_v24  ;;  %v1801_v58 = vadd.f32 %v4724_v23, %v1800_v49  ;;  %v2625_v19 = vmax.f32 %v2305_v1, 0.0  ;;  %v2308_v8 = vadd.f32 %v4724_v23, %v3759_v13 }
 0x1aa   :  { %v3635_v45 = vpop.f32.mrf.mxu0  ;;  %v2501_v61 = vmax.f32 %v1809_v57, 0.0  ;;  %v2315_v1 = vpop.f32.mrf.mxu1 }
 0x1ab   :  { %v2767_v44 = vadd.f32 %v2766_v41, %v2497_v25  ;;  %v2499_v52 = vmax.f32 %v1801_v58, 0.0  ;;  %v1812_v10 = vadd.f32 %v4724_v23, %v3635_v45  ;;  %v2626_v41 = vmax.f32 %v2308_v8, 0.0 }
 0x1ac   :  { %v1803_v48 = vpop.f32.mrf.mxu0  ;;  %v2915_v58 = vadd.f32 %v2914_v17, %v2625_v19 }
 0x1ad   :  { %v2768_v28 = vadd.f32 %v2767_v44, %v2498_v43  ;;  %v1804_v22 = vadd.f32 %v4724_v23, %v1803_v48  ;;  %v2502_v31 = vmax.f32 %v1812_v10, 0.0  ;;  %v2313_v43 = vadd.f32 %v4724_v23, %v2312_v0 }
 0x1ae   :  { %v3638_v3 = vpop.f32.mrf.mxu0  ;;  %v2316_v10 = vadd.f32 %v4724_v23, %v2315_v1 }
 0x1af   :  { %v2769_v33 = vadd.f32 %v2768_v28, %v2499_v52  ;;  %v2500_v51 = vmax.f32 %v1804_v22, 0.0  ;;  %v1825_v45 = vadd.f32 %v4724_v23, %v3638_v3  ;;  %v2627_v22 = vmax.f32 %v2313_v43, 0.0  ;;  %v3766_v3 = vpop.f32.mrf.mxu1 }
 0x1b0   :  { %v1816_v6 = vpop.f32.mrf.mxu0 }
 0x1b1   :  { %v2770_v24 = vadd.f32 %v2769_v33, %v2500_v51  ;;  %v1817_v49 = vadd.f32 %v4724_v23, %v1816_v6  ;;  %v2916_v33 = vadd.f32 %v2915_v58, %v2626_v41  ;;  %v2505_v51 = vmax.f32 %v1825_v45, 0.0  ;;  %v2328_v58 = vpop.f32.mrf.mxu1 }
 0x1b2   :  { %v3639_v37 = vpop.f32.mrf.mxu0 }
 0x1b3   :  { %v2771_v14 = vadd.f32 %v2770_v24, %v2501_v61  ;;  %v2503_v44 = vmax.f32 %v1817_v49, 0.0  ;;  %v1828_v57 = vadd.f32 %v4724_v23, %v3639_v37  ;;  %v2321_v24 = vadd.f32 %v4724_v23, %v3762_v54 }
 0x1b4   :  { %v1819_v25 = vpop.f32.mrf.mxu0  ;;  %v2917_v49 = vadd.f32 %v2916_v33, %v2627_v22 }
 0x1b5   :  { %v2772_v48 = vadd.f32 %v2771_v14, %v2502_v31  ;;  %v1820_v13 = vadd.f32 %v4724_v23, %v1819_v25  ;;  %v2506_v8 = vmax.f32 %v1828_v57, 0.0  ;;  %v2628_v31 = vmax.f32 %v2316_v10, 0.0 }
 0x1b6   :  { %v3642_v39 = vpop.f32.mrf.mxu0  ;;  %v2629_v1 = vmax.f32 %v2321_v24, 0.0 }
 0x1b7   :  { %v2773_v30 = vadd.f32 %v2772_v48, %v2503_v44  ;;  %v2504_v52 = vmax.f32 %v1820_v13, 0.0  ;;  %v1841_v37 = vadd.f32 %v4724_v23, %v3642_v39  ;;  %v2918_v57 = vadd.f32 %v2917_v49, %v2628_v31  ;;  %v3767_v39 = vpop.f32.mrf.mxu1 }
 0x1b8   :  { %v1832_v28 = vpop.f32.mrf.mxu0 }
 0x1b9   :  { %v2774_v6 = vadd.f32 %v2773_v30, %v2504_v52  ;;  %v1833_v0 = vadd.f32 %v4724_v23, %v1832_v28  ;;  %v2324_v30 = vadd.f32 %v4724_v23, %v3763_v36  ;;  %v2509_v54 = vmax.f32 %v1841_v37, 0.0  ;;  %v2331_v24 = vpop.f32.mrf.mxu1 }
 0x1ba   :  { %v3643_v19 = vpop.f32.mrf.mxu0 }
 0x1bb   :  { %v2775_v17 = vadd.f32 %v2774_v6, %v2505_v51  ;;  %v2507_v14 = vmax.f32 %v1833_v0, 0.0  ;;  %v1844_v44 = vadd.f32 %v4724_v23, %v3643_v19  ;;  %v2630_v6 = vmax.f32 %v2324_v30, 0.0 }
 0x1bc   :  { %v1835_v61 = vpop.f32.mrf.mxu0  ;;  %v2919_v0 = vadd.f32 %v2918_v57, %v2629_v1 }
 0x1bd   :  { %v2776_v25 = vadd.f32 %v2775_v17, %v2506_v8  ;;  %v1836_v41 = vadd.f32 %v4724_v23, %v1835_v61  ;;  %v2510_v33 = vmax.f32 %v1844_v44, 0.0  ;;  %v2329_v8 = vadd.f32 %v4724_v23, %v2328_v58 }
 0x1be   :  { %v3646_v43 = vpop.f32.mrf.mxu0  ;;  %v2332_v44 = vadd.f32 %v4724_v23, %v2331_v24 }
 0x1bf   :  { %v2777_v45 = vadd.f32 %v2776_v25, %v2507_v14  ;;  %v2508_v48 = vmax.f32 %v1836_v41, 0.0  ;;  %v1857_v19 = vadd.f32 %v4724_v23, %v3646_v43  ;;  %v2631_v41 = vmax.f32 %v2329_v8, 0.0  ;;  %v3770_v43 = vpop.f32.mrf.mxu1 }
 0x1c0   :  { %v1848_v13 = vpop.f32.mrf.mxu0 }
 0x1c1   :  { %v2778_v52 = vadd.f32 %v2777_v45, %v2508_v48  ;;  %v1849_v28 = vadd.f32 %v4724_v23, %v1848_v13  ;;  %v2920_v45 = vadd.f32 %v2919_v0, %v2630_v6  ;;  %v2513_v48 = vmax.f32 %v1857_v19, 0.0  ;;  %v2344_v0 = vpop.f32.mrf.mxu1 }
 0x1c2   :  { %v3647_v22 = vpop.f32.mrf.mxu0 }
 0x1c3   :  { %v2779_v10 = vadd.f32 %v2778_v52, %v2509_v54  ;;  %v2511_v17 = vmax.f32 %v1849_v28, 0.0  ;;  %v1860_v37 = vadd.f32 %v4724_v23, %v3647_v22  ;;  %v2337_v52 = vadd.f32 %v4724_v23, %v3766_v3 }
 0x1c4   :  { %v1851_v51 = vpop.f32.mrf.mxu0  ;;  %v2921_v28 = vadd.f32 %v2920_v45, %v2631_v41 }
 0x1c5   :  { %v2780_v61 = vadd.f32 %v2779_v10, %v2510_v33  ;;  %v1852_v36 = vadd.f32 %v4724_v23, %v1851_v51  ;;  %v2514_v30 = vmax.f32 %v1860_v37, 0.0  ;;  %v2632_v33 = vmax.f32 %v2332_v44, 0.0 }
 0x1c6   :  { %v3650_v49 = vpop.f32.mrf.mxu0  ;;  %v2633_v24 = vmax.f32 %v2337_v52, 0.0 }
 0x1c7   :  { %v2781_v31 = vadd.f32 %v2780_v61, %v2511_v17  ;;  %v2512_v14 = vmax.f32 %v1852_v36, 0.0  ;;  %v1873_v22 = vadd.f32 %v4724_v23, %v3650_v49  ;;  %v2922_v37 = vadd.f32 %v2921_v28, %v2632_v33 }
 0x1c8   :  { %v1864_v25 = vpop.f32.mrf.mxu0 }
 0x1c9   :  { %v2782_v13 = vadd.f32 %v2781_v31, %v2512_v14  ;;  %v1865_v58 = vadd.f32 %v4724_v23, %v1864_v25  ;;  %v2340_v31 = vadd.f32 %v4724_v23, %v3767_v39  ;;  %v2517_v3 = vmax.f32 %v1873_v22, 0.0  ;;  %v3771_v25 = vpop.f32.mrf.mxu1 }
 0x1ca   :  { %v3651_v1 = vpop.f32.mrf.mxu0 }
 0x1cb   :  { %v2783_v57 = vadd.f32 %v2782_v13, %v2513_v48  ;;  %v2515_v10 = vmax.f32 %v1865_v58, 0.0  ;;  %v1876_v17 = vadd.f32 %v4724_v23, %v3651_v1  ;;  %v2634_v13 = vmax.f32 %v2340_v31, 0.0  ;;  %v2347_v39 = vpop.f32.mrf.mxu1 }
 0x1cc   :  { %v1867_v54 = vpop.f32.mrf.mxu0  ;;  %v2923_v58 = vadd.f32 %v2922_v37, %v2633_v24 }
 0x1cd   :  { %v2784_v51 = vadd.f32 %v2783_v57, %v2514_v30  ;;  %v1868_v6 = vadd.f32 %v4724_v23, %v1867_v54  ;;  %v2518_v49 = vmax.f32 %v1876_v17, 0.0  ;;  %v2345_v30 = vadd.f32 %v4724_v23, %v2344_v0 }
 0x1ce   :  { %v3654_v8 = vpop.f32.mrf.mxu0 }
 0x1cf   :  { %v2785_v19 = vadd.f32 %v2784_v51, %v2515_v10  ;;  %v2516_v61 = vmax.f32 %v1868_v6, 0.0  ;;  %v1889_v57 = vadd.f32 %v4724_v23, %v3654_v8  ;;  %v2635_v10 = vmax.f32 %v2345_v30, 0.0 }
 0x1d0   :  { %v1880_v36 = vpop.f32.mrf.mxu0  ;;  %v2924_v51 = vadd.f32 %v2923_v58, %v2634_v13  ;;  %v2348_v6 = vadd.f32 %v4724_v23, %v2347_v39  ;;  %v1900_v8 = vadd.f32 %v4724_v23, %v4465_v9  ;;  %v1908_v13 = vadd.f32 %v4724_v23, %v4454_v2 }
 0x1d1   :  { %v2786_v14 = vadd.f32 %v2785_v19, %v2516_v61  ;;  %v1881_v44 = vadd.f32 %v4724_v23, %v1880_v36  ;;  %v1897_v19 = vadd.f32 %v4724_v23, %v4448_v60  ;;  %v2521_v0 = vmax.f32 %v1889_v57, 0.0  ;;  %v3774_v36 = vpop.f32.mrf.mxu1 }
 0x1d2   :  { %v3655_v41 = vpop.f32.mrf.mxu0  ;;  %v2524_v58 = vmax.f32 %v1900_v8, 0.0  ;;  %v2356_v57 = vadd.f32 %v4724_v23, %v3771_v25  ;;  %v1913_v39 = vadd.f32 %v4724_v23, %v4476_v20  ;;  %v4876_v25 = vld [vmem:[%s4946_s2] ss:$0 sm:$0xff] }
 0x1d3   :  { %v2787_v45 = vadd.f32 %v2786_v14, %v2517_v3  ;;  %v2519_v28 = vmax.f32 %v1881_v44, 0.0  ;;  %v1892_v33 = vadd.f32 %v4724_v23, %v3655_v41  ;;  %v2353_v3 = vadd.f32 %v4724_v23, %v3770_v43 }
 0x1d4   :  { %v1883_v48 = vpop.f32.mrf.mxu0  ;;  %v2925_v14 = vadd.f32 %v2924_v51, %v2635_v10  ;;  %v2636_v41 = vmax.f32 %v2348_v6, 0.0  ;;  %v2638_v51 = vmax.f32 %v2356_v57, 0.0  ;;  %v1921_v20 = vadd.f32 %v4876_v25, %v4470_v15 }
 0x1d5   :  { %v2788_v1 = vadd.f32 %v2787_v45, %v2518_v49  ;;  %v1884_v54 = vadd.f32 %v4724_v23, %v1883_v48  ;;  %v2522_v31 = vmax.f32 %v1892_v33, 0.0  ;;  %v1905_v49 = vadd.f32 %v4724_v23, %v4442_v55  ;;  %v2360_v48 = vpop.f32.mrf.mxu1 }
 0x1d6   :  { %v2523_v45 = vmax.f32 %v1897_v19, 0.0  ;;  %v2526_v33 = vmax.f32 %v1908_v13, 0.0  ;;  %v2361_v19 = vadd.f32 %v4876_v25, %v2360_v48  ;;  %v1929_v15 = vadd.f32 %v4876_v25, %v4507_v47 }
 0x1d7   :  { %v2789_v52 = vrot.slane %v2788_v1, 4  ;;  %v2520_v22 = vmax.f32 %v1884_v54, 0.0  ;;  %v2926_v54 = vadd.f32 %v2925_v14, %v2636_v41  ;;  %v2525_v43 = vmax.f32 %v1905_v49, 0.0 }
 0x1d8   :  { %v2529_v41 = vmax.f32 %v1921_v20, 0.0  ;;  %v2369_v48 = vadd.f32 %v4876_v25, %v3774_v36  ;;  %v1940_v47 = vadd.f32 %v4876_v25, %v4513_v53  ;;  %v1945_v36 = vadd.f32 %v4876_v25, %v4536_v11 }
 0x1d9   :  { %v2790_v17 = vadd.f32 %v2789_v52, %v2788_v1  ;;  %v2795_v61 = vadd.f32 %v2520_v22, %v2519_v28  ;;  %v2637_v1 = vmax.f32 %v2353_v3, 0.0  ;;  %v3775_v28 = vpop.f32.mrf.mxu1  ;;  %v1916_v22 = vadd.f32 %v4724_v23, %v4493_v34 }
 0x1da   :  { %v1924_v34 = vadd.f32 %v4876_v25, %v4482_v26  ;;  %v1956_v11 = vadd.f32 %v4876_v25, %v4542_v18 }
 0x1db   :  { %v2791_v24 = vrot.slane %v2790_v17, 2  ;;  %v2796_v37 = vadd.f32 %v2795_v61, %v2521_v0  ;;  %v2927_v6 = vadd.f32 %v2926_v54, %v2637_v1  ;;  %v2363_v8 = vpop.f32.mrf.mxu1  ;;  %v2528_v23 = vmax.f32 %v1916_v22, 0.0 }
 0x1dc   :  { %v2364_v14 = vadd.f32 %v4876_v25, %v2363_v8  ;;  %v2534_v22 = vmax.f32 %v1940_v47, 0.0 }
 0x1dd   :  { %v2792_v44 = vadd.f32 %v2791_v24, %v2790_v17  ;;  %v2797_v60 = vadd.f32 %v2796_v37, %v2522_v31  ;;  %v2527_v17 = vmax.f32 %v1913_v39, 0.0  ;;  %v2639_v37 = vmax.f32 %v2361_v19, 0.0 }
 0x1de   :  { %v2928_v3 = vadd.f32 %v2927_v6, %v2638_v51  ;;  %v2640_v13 = vmax.f32 %v2364_v14, 0.0  ;;  %v2372_v39 = vadd.f32 %v4876_v25, %v3775_v28  ;;  %v1953_v6 = vadd.f32 %v4876_v25, %v4530_v5 }
 0x1df   :  { %v2793_v30 = vrot.slane %v2792_v44, 1  ;;  %v2798_v9 = vadd.f32 %v2797_v60, %v2523_v45  ;;  %v3778_v45 = vpop.f32.mrf.mxu1  ;;  %v1932_v60 = vadd.f32 %v4876_v25, %v4525_v62  ;;  %v2535_v28 = vmax.f32 %v1945_v36, 0.0 }
 0x1e0   :  { %v1964_v5 = vadd.f32 %v4876_v25, %v4585_v59  ;;  %v2385_v14 = vadd.f32 %v4876_v25, %v3778_v45  ;;  %v1977_v45 = vadd.f32 %v4876_v25, %v4596_v12  ;;  %v1993_v36 = vadd.f32 %v4876_v25, %v4620_v46 }
 0x1e1   :  { %v2794_v52 = vadd.f32 %v2793_v30, %v2792_v44  ;;  %v2799_v55 = vadd.f32 %v2798_v9, %v2524_v58  ;;  %v2530_v44 = vmax.f32 %v1924_v34, 0.0  ;;  %v1937_v58 = vadd.f32 %v4876_v25, %v4498_v40  ;;  %v2376_v1 = vpop.f32.mrf.mxu1 }
 0x1e2   :  { %v2531_v30 = vmax.f32 %v1929_v15, 0.0  ;;  %v2532_v57 = vmax.f32 %v1932_v60, 0.0  ;;  %v1948_v40 = vadd.f32 %v4876_v25, %v4553_v27  ;;  %v2377_v53 = vadd.f32 %v4876_v25, %v2376_v1 }
 0x1e3   :  { %v2946_v10 = vpack.c.bf16 %v2794_v52, %v2794_v52  ;;  %v2800_v2 = vadd.f32 %v2799_v55, %v2525_v43  ;;  %v2641_v43 = vmax.f32 %v2369_v48, 0.0  ;;  %v2533_v52 = vmax.f32 %v1937_v58, 0.0 }
 0x1e4   :  { %v2537_v34 = vmax.f32 %v1953_v6, 0.0  ;;  %v1969_v15 = vadd.f32 %v4876_v25, %v4558_v35  ;;  %v1972_v60 = vadd.f32 %v4876_v25, %v4573_v50  ;;  %v2645_v48 = vmax.f32 %v2385_v14, 0.0 }
 0x1e5   :  { %v2985_v0 = vunpack.c.l.b16 %v2946_v10  ;;  %v2801_v61 = vadd.f32 %v2800_v2, %v2526_v33  ;;  %v3779_v33 = vpop.f32.mrf.mxu1  ;;  %v2642_v2 = vmax.f32 %v2372_v39, 0.0  ;;  %v1980_v35 = vadd.f32 %v4876_v25, %v4610_v29 }
 0x1e6   :  { %v2541_v59 = vmax.f32 %v1969_v15, 0.0  ;;  %v1985_v50 = vadd.f32 %v4876_v25, %v4590_v4  ;;  %v2863_v29 = vrot.slane %v4715_v32, 4  ;;  %v2900_v4 = vrot.slane %v4802_v7, 4 }
 0x1e7   :  { %v4884_v24 = vsel %vm2994_vm5, %v2985_v0, %v4819_v16  ;;  %v2802_v31 = vadd.f32 %v2801_v61, %v2527_v17  ;;  %v2929_v16 = vadd.f32 %v2928_v3, %v2639_v37  ;;  %v2379_v20 = vpop.f32.mrf.mxu1  ;;  %v2536_v17 = vmax.f32 %v1948_v40, 0.0 }
 0x1e8   :  { %v2643_v61 = vmax.f32 %v2377_v53, 0.0  ;;  %v2380_v27 = vadd.f32 %v4876_v25, %v2379_v20  ;;  %v2538_v37 = vmax.f32 %v1956_v11, 0.0  ;;  %v2544_v39 = vmax.f32 %v1980_v35, 0.0 }
 0x1e9   :  { %v2803_v49 = vadd.f32 %v2802_v31, %v2528_v23  ;;  %v2930_v62 = vadd.f32 %v2929_v16, %v2640_v13  ;;  %v1961_v23 = vadd.f32 %v4876_v25, %v4567_v42  ;;  %v2388_v16 = vadd.f32 %v4876_v25, %v3779_v33 }
 0x1ea   :  { %v2644_v18 = vmax.f32 %v2380_v27, 0.0  ;;  %v2545_v12 = vmax.f32 %v1985_v50, 0.0  ;;  %v2864_v53 = vadd.f32 %v2863_v29, %v4715_v32  ;;  %v2004_v46 = vadd.f32 %v4876_v25, %v4626_v56 }
 0x1eb   :  { %v2804_v26 = vadd.f32 %v2803_v49, %v2529_v41  ;;  %v2931_v51 = vadd.f32 %v2930_v62, %v2641_v43  ;;  %v2539_v49 = vmax.f32 %v1961_v23, 0.0  ;;  %v2646_v1 = vmax.f32 %v2388_v16, 0.0 }
 0x1ec   :  { %v1988_v43 = vadd.f32 %v4876_v25, %v4602_v21  ;;  %v2001_v21 = vadd.f32 %v4876_v25, %v4615_v38 }
 0x1ed   :  { %v2805_v9 = vadd.f32 %v2804_v26, %v2530_v44  ;;  %v2932_v8 = vadd.f32 %v2931_v51, %v2642_v2  ;;  %v2540_v26 = vmax.f32 %v1964_v5, 0.0  ;;  %v2547_v2 = vmax.f32 %v1993_v36, 0.0 }
 0x1ee   :  { %v2546_v33 = vmax.f32 %v1988_v43, 0.0 }
 0x1ef   :  { %v2806_v54 = vadd.f32 %v2805_v9, %v2531_v30  ;;  %v2933_v41 = vadd.f32 %v2932_v8, %v2643_v61  ;;  %v2542_v30 = vmax.f32 %v1972_v60, 0.0 }
 0x1f1   :  { %v2807_v55 = vadd.f32 %v2806_v54, %v2532_v57  ;;  %v2934_v13 = vadd.f32 %v2933_v41, %v2644_v18  ;;  %v2543_v57 = vmax.f32 %v1977_v45, 0.0 }
 0x1f3   :  { %v2808_v10 = vadd.f32 %v2807_v55, %v2533_v52  ;;  %v2935_v47 = vadd.f32 %v2934_v13, %v2645_v48 }
 0x1f5   :  { %v2809_v19 = vadd.f32 %v2808_v10, %v2534_v22  ;;  %v2936_v52 = vadd.f32 %v2935_v47, %v2646_v1  ;;  %v1996_v22 = vadd.f32 %v4876_v25, %v4628_v63  ;;  %v2549_v63 = vmax.f32 %v2001_v21, 0.0  ;;  %v3369_v1 = vld [vmem:[%s4948_s4] ss:$0 sm:$0xff] }
 0x1f7   :  { %v2810_v0 = vadd.f32 %v2809_v19, %v2535_v28  ;;  %v2937_v10 = vrot.slane %v2936_v52, 4  ;;  %v2548_v6 = vmax.f32 %v1996_v22, 0.0  ;;  %v2901_v28 = vadd.f32 %v2900_v4, %v4802_v7 }
 0x1f9   :  { %v2811_v31 = vadd.f32 %v2810_v0, %v2536_v17  ;;  %v2938_v20 = vadd.f32 %v2937_v10, %v2936_v52  ;;  %v2865_v17 = vrot.slane %v2864_v53, 2  ;;  %v2550_v0 = vmax.f32 %v2004_v46, 0.0 }
 0x1fa   :  { %v2902_v61 = vrot.slane %v2901_v28, 2 }
 0x1fb   :  { %v2812_v3 = vadd.f32 %v2811_v31, %v2537_v34  ;;  %v2939_v27 = vrot.slane %v2938_v20, 2  ;;  %v2866_v34 = vadd.f32 %v2865_v17, %v2864_v53 }
 0x1fc   :  { %v2903_v23 = vadd.f32 %v2902_v61, %v2901_v28 }
 0x1fd   :  { %v2813_v44 = vadd.f32 %v2812_v3, %v2538_v37  ;;  %v2940_v32 = vadd.f32 %v2939_v27, %v2938_v20  ;;  %v2867_v5 = vrot.slane %v2866_v34, 1 }
 0x1fe   :  { %v2904_v56 = vrot.slane %v2903_v23, 1 }
 0x1ff   :  { %v2814_v42 = vadd.f32 %v2813_v44, %v2539_v49  ;;  %v2941_v3 = vrot.slane %v2940_v32, 1  ;;  %v2868_v14 = vadd.f32 %v2867_v5, %v2866_v34 }
 0x200   :  { %v2905_v41 = vadd.f32 %v2904_v56, %v2903_v23 }
 0x201   :  { %v2815_v58 = vadd.f32 %v2814_v42, %v2540_v26  ;;  %v2942_v15 = vadd.f32 %v2941_v3, %v2940_v32  ;;  %v2948_v44 = vpack.c.bf16 %v2868_v14, %v2868_v14 }
 0x202   :  { %v2949_v60 = vpack.c.bf16 %v2905_v41, %v2905_v41 }
 0x203   :  { %v2816_v9 = vadd.f32 %v2815_v58, %v2541_v59  ;;  %v2950_v42 = vpack.c.bf16 %v2942_v15, %v2942_v15  ;;  %v2987_v16 = vunpack.c.l.b16 %v2948_v44 }
 0x204   :  { %v2988_v13 = vunpack.c.l.b16 %v2949_v60 }
 0x205   :  { %v2817_v54 = vadd.f32 %v2816_v9, %v2542_v30  ;;  %v2989_v45 = vunpack.c.l.b16 %v2950_v42 }
 0x207   :  { %v2818_v62 = vadd.f32 %v2817_v54, %v2543_v57 }
 0x209   :  { %v2819_v55 = vadd.f32 %v2818_v62, %v2544_v39 }
 0x20b   :  { %v2820_v40 = vadd.f32 %v2819_v55, %v2545_v12 }
 0x20d   :  { %v2821_v51 = vadd.f32 %v2820_v40, %v2546_v33 }
 0x20f   :  { %v2822_v19 = vadd.f32 %v2821_v51, %v2547_v2 }
 0x211   :  { %v2823_v11 = vadd.f32 %v2822_v19, %v2548_v6 }
 0x213   :  { %v2824_v8 = vadd.f32 %v2823_v11, %v2549_v63 }
 0x215   :  { %v2825_v38 = vadd.f32 %v2824_v8, %v2550_v0 }
 0x217   :  { %v2826_v31 = vrot.slane %v2825_v38, 4 }
 0x219   :  { %v2827_v37 = vadd.f32 %v2826_v31, %v2825_v38 }
 0x21b   :  { %v2828_v25 = vrot.slane %v2827_v37, 2 }
 0x21d   :  { %v2829_v7 = vadd.f32 %v2828_v25, %v2827_v37 }
 0x21f   :  { %v2830_v18 = vrot.slane %v2829_v7, 1 }
 0x221   :  { %v2831_v49 = vadd.f32 %v2830_v18, %v2829_v7 }
 0x223   :  { %v2947_v26 = vpack.c.bf16 %v2831_v49, %v2831_v49 }
 0x225   :  { %v2986_v48 = vunpack.c.l.b16 %v2947_v26 }
 0x227   :  { %v2997_v59 = vsel %vm2996_vm6, %v2986_v48, %v4884_v24 }
 0x228   :  { %v2999_v58 = vsel %vm2998_vm7, %v2987_v16, %v2997_v59 }
 0x229   :  { %v3001_v30 = vsel %vm3000_vm8, %v2988_v13, %v2999_v58 }
 0x22a   :  { %v3003_v35 = vsel %vm3002_vm9, %v2989_v45, %v3001_v30 }
 0x22b   :  { %v3004_v9 = vpack.c.b16 %v3003_v35, %v3003_v35 }
 0x22d   :  { %3797 = vmatmul.mubr.bf16.vlgmr.msra.gmra.mxu1 %v3004_v9 }
 0x2ed   :  { %v3088_v47 = vpop.f32.mrf.mxu1 }
 0x2ee   :  { %v3089_v50 = vadd.f32 %v3369_v1, %v3088_v47 }
 0x2ef   :  { %v3798_v57 = vpop.f32.mrf.mxu1 }
 0x2f0   :  { %3094 = vst [vmem:[#allocation2] sm:$0xff] %v3089_v50 }
 0x2f1   :  { %v3091_v54 = vpop.f32.mrf.mxu1 }
 0x2f2   :  { %3963 = shalt.err (!%p3960_p4)
}
 0x2f3   :  { %3104 = dma.vmem_to_hbm [thread:$0]  %s3102_s16, 128, %s4949_s5, [#allocation3]   ;;  %v3799_v24 = vpop.f32.mrf.mxu1 }
 0x2f4   :  { %3972 = dma.done.wait [#allocation3], 128  }
 0x2f5   :  { %3973 = vsyncadd [#allocation3], 4294967168 }
 0x2f6   :  { %3108 = vsyncpa [#allocation3], 1 }

</bundles_post_ra>
